<compile_context>
chip_gen: v7x
topology: tpu7x:2x2x1
jax: 0.10.0
libtpu: 0.0.40
codegen_flags: <defaults>
</compile_context>

<pallas_src>
import math

import jax
import jax.numpy as jnp
from jax import lax
from jax.experimental import pallas as pl
from jax.experimental.pallas import tpu as pltpu

# Keep both the in-kernel MXU matmuls and the XLA reference at full f32 precision
# so the correctness check is tight.
jax.config.update("jax_default_matmul_precision", "highest")

GN_EPS = 1e-5                      # nn.GroupNorm default eps
VMEM_LIMIT = 32 * 1024 * 1024      # explicit scoped-VMEM budget (fits v5e/v6e/v7x)


# ----------------------------------------------------------------------------
# host-side helpers
# ----------------------------------------------------------------------------
def swish(x):
    return x * jax.nn.sigmoid(x)


def make_tap_masks(H, W):
    """(9, H*W) validity masks for the 3x3 'same' conv taps."""
    p = jnp.arange(H * W)
    y = p // W
    x = p % W
    rows = []
    for dy in range(3):
        for dx in range(3):
            yy = y + dy - 1
            xx = x + dx - 1
            valid = (yy >= 0) & (yy < H) & (xx >= 0) & (xx < W)
            rows.append(valid.astype(jnp.float32))
    return jnp.stack(rows, axis=0)


def group_mean_matrix(C, groups, S):
    """(C, C) matrix M with M @ per_channel_sum == per-group mean broadcast to channels."""
    cg = C // groups
    g = jnp.arange(C) // cg
    return (g[:, None] == g[None, :]).astype(jnp.float32) / float(cg * S)


def _const_spec(shape):
    nd = len(shape)
    return pl.BlockSpec(shape, lambda n, nd=nd: (0,) * nd)


# ----------------------------------------------------------------------------
# in-kernel helpers
# ----------------------------------------------------------------------------
def _gn_swish(x, gm_ref, gamma_ref, beta_ref):
    """Fused GroupNorm + Swish on a (C, S) tile.  Single pass over x:
    var = E[x^2] - E[x]^2 ; gamma*rsqrt folded into one scale/shift FMA."""
    s1 = jnp.sum(x, axis=1, keepdims=True)            # (C, 1)
    s2 = jnp.sum(x * x, axis=1, keepdims=True)        # (C, 1)
    mu = jnp.dot(gm_ref[...], s1, preferred_element_type=jnp.float32)
    ex2 = jnp.dot(gm_ref[...], s2, preferred_element_type=jnp.float32)
    var = ex2 - mu * mu
    scale = gamma_ref[...] * lax.rsqrt(var + GN_EPS)
    shift = beta_ref[...] - scale * mu
    h = scale * x + shift
    return h * (1.0 / (1.0 + jnp.exp(-h)))             # swish (EUP exp)


def _im2col_3x3(h, m_ref, p_ref, cin, H, W):
    """Write the 9 masked 3x3 taps of h (cin, S) into the im2col scratch
    p_ref (9*cin, S) using static shifted lane slices (no pad, no wraparound)."""
    S = H * W
    t = 0
    for dy in range(3):
        for dx in range(3):
            d = (dy - 1) * W + (dx - 1)
            r0, r1 = t * cin, (t + 1) * cin
            if d == 0:
                p_ref[r0:r1, :] = h * m_ref[t:t + 1, :]
            elif d > 0:
                p_ref[r0:r1, 0:S - d] = h[:, d:S] * m_ref[t:t + 1, 0:S - d]
                p_ref[r0:r1, S - d:S] = jnp.zeros((cin, d), jnp.float32)
            else:
                nd = -d
                p_ref[r0:r1, 0:nd] = jnp.zeros((cin, nd), jnp.float32)
                p_ref[r0:r1, nd:S] = h[:, 0:S - nd] * m_ref[t:t + 1, nd:S]
            t += 1


# ----------------------------------------------------------------------------
# kernels
# ----------------------------------------------------------------------------
def make_resblock_kernel(H, W, cin, cout, has_proj):
    """Fused ResidualBlock: GN+Swish -> conv3x3 -> (+bias+time) -> GN+Swish ->
    conv3x3 (+bias) -> + shortcut.  One K=9C matmul per conv."""
    def kernel(*refs):
        (x_ref, tb_ref, gm1_ref, ga1_ref, be1_ref, w1_ref,
         gm2_ref, ga2_ref, be2_ref, w2_ref, b2_ref, m_ref) = refs[:12]
        if has_proj:
            ws_ref, bs_ref, o_ref, p1_ref, p2_ref = refs[12:]
        else:
            o_ref, p1_ref, p2_ref = refs[12:]

        x = x_ref[0]                                            # (cin, S)
        h = _gn_swish(x, gm1_ref, ga1_ref, be1_ref)
        _im2col_3x3(h, m_ref, p1_ref, cin, H, W)
        # conv1 bias + time embedding folded into tb (per-sample (cout,1))
        h = jnp.dot(w1_ref[...], p1_ref[...],
                    preferred_element_type=jnp.float32) + tb_ref[0]
        h = _gn_swish(h, gm2_ref, ga2_ref, be2_ref)             # dropout == identity (eval)
        _im2col_3x3(h, m_ref, p2_ref, cout, H, W)
        h = jnp.dot(w2_ref[...], p2_ref[...],
                    preferred_element_type=jnp.float32) + b2_ref[...]
        if has_proj:
            sc = jnp.dot(ws_ref[...], x,
                         preferred_element_type=jnp.float32) + bs_ref[...]
        else:
            sc = x
        o_ref[0] = h + sc
    return kernel


def make_conv3x3_kernel(H, W, cin):
    def kernel(x_ref, w_ref, b_ref, m_ref, o_ref, p_ref):
        x = x_ref[0]
        _im2col_3x3(x, m_ref, p_ref, cin, H, W)
        o_ref[0] = (jnp.dot(w_ref[...], p_ref[...],
                            preferred_element_type=jnp.float32) + b_ref[...])
    return kernel


def make_normact_conv_kernel(H, W, cin):
    def kernel(x_ref, gm_ref, ga_ref, be_ref, w_ref, b_ref, m_ref, o_ref, p_ref):
        h = _gn_swish(x_ref[0], gm_ref, ga_ref, be_ref)
        _im2col_3x3(h, m_ref, p_ref, cin, H, W)
        o_ref[0] = (jnp.dot(w_ref[...], p_ref[...],
                            preferred_element_type=jnp.float32) + b_ref[...])
    return kernel


def make_attn_kernel(C):
    """AttentionBlock with n_heads=1, d_k=C (the UNet only uses defaults).
    Token-major (S, C) per-sample block; note self.norm is unused in the
    reference forward, so no normalization is applied here either."""
    scale = float(C) ** -0.5

    def kernel(x_ref, wp_ref, bp_ref, wo_ref, bo_ref, o_ref):
        x = x_ref[0]                                            # (S, C)
        qkv = jnp.dot(x, wp_ref[...],
                      preferred_element_type=jnp.float32) + bp_ref[...]
        q = qkv[:, 0:C]
        k = qkv[:, C:2 * C]
        v = qkv[:, 2 * C:3 * C]
        logits = jnp.dot(q, k.T, preferred_element_type=jnp.float32) * scale
        m = jnp.max(logits, axis=1, keepdims=True)
        e = jnp.exp(logits - m)
        attn = e / jnp.sum(e, axis=1, keepdims=True)
        res = jnp.dot(attn, v, preferred_element_type=jnp.float32)
        o_ref[0] = (jnp.dot(res, wo_ref[...],
                            preferred_element_type=jnp.float32) + bo_ref[...] + x)
    return kernel


# ----------------------------------------------------------------------------
# pallas wrappers (all take / return NCHW; the (N, C, H*W) reshape is free)
# ----------------------------------------------------------------------------
def pallas_resblock(x, temb, p):
    N, Cin, H, W = x.shape
    Cout = p["w1"].shape[0]
    S = H * W
    xf = x.reshape(N, Cin, S)
    # time-embedding projection; conv1 bias folded in.
    tproj = swish(temb) @ p["wt"].T + p["bt"]
    tb = (tproj + p["bc1"]).reshape(N, Cout, 1)
    # OIHW -> (Cout, 9*Cin) with tap-major ordering matching _im2col_3x3.
    w1f = jnp.transpose(p["w1"], (0, 2, 3, 1)).reshape(Cout, 9 * Cin)
    w2f = jnp.transpose(p["w2"], (0, 2, 3, 1)).reshape(Cout, 9 * Cout)
    gm1 = group_mean_matrix(Cin, 32, S)
    gm2 = group_mean_matrix(Cout, 32, S)
    masks = make_tap_masks(H, W)

    operands = [xf, tb,
                gm1, p["g1"].reshape(Cin, 1), p["bn1"].reshape(Cin, 1), w1f,
                gm2, p["g2"].reshape(Cout, 1), p["bn2"].reshape(Cout, 1), w2f,
                p["bc2"].reshape(Cout, 1), masks]
    has_proj = "ws" in p
    if has_proj:
        operands += [p["ws"].reshape(Cout, Cin), p["bs"].reshape(Cout, 1)]

    in_specs = [pl.BlockSpec((1, Cin, S), lambda n: (n, 0, 0)),
                pl.BlockSpec((1, Cout, 1), lambda n: (n, 0, 0))]
    in_specs += [_const_spec(op.shape) for op in operands[2:]]

    flops = 2 * N * S * (9 * Cin * Cout + 9 * Cout * Cout
                         + (Cin * Cout if has_proj else 0))
    bytes_acc = 4 * (xf.size + tb.size + w1f.size + w2f.size + gm1.size + gm2.size
                     + masks.size + N * Cout * S)
    cost = pl.CostEstimate(flops=int(flops),
                           transcendentals=int(N * S * (Cin + Cout)),
                           bytes_accessed=int(bytes_acc))

    out = pl.pallas_call(
        make_resblock_kernel(H, W, Cin, Cout, has_proj),
        out_shape=jax.ShapeDtypeStruct((N, Cout, S), jnp.float32),
        grid=(N,),
        in_specs=in_specs,
        out_specs=pl.BlockSpec((1, Cout, S), lambda n: (n, 0, 0)),
        scratch_shapes=[pltpu.VMEM((9 * Cin, S), jnp.float32),
                        pltpu.VMEM((9 * Cout, S), jnp.float32)],
        compiler_params=pltpu.CompilerParams(
            dimension_semantics=("parallel",),
            vmem_limit_bytes=VMEM_LIMIT),
        cost_estimate=cost,
    )(*operands)
    return out.reshape(N, Cout, H, W)


def pallas_conv3x3(x, w, b):
    """Plain 3x3 'same' conv (used for image_proj).  Cin is zero-padded to a
    multiple of 8 so the im2col rows stay sublane-aligned."""
    N, Cin, H, W = x.shape
    Cout = w.shape[0]
    S = H * W
    Cin_p = ((Cin + 7) // 8) * 8
    if Cin_p != Cin:
        x = jnp.concatenate([x, jnp.zeros((N, Cin_p - Cin, H, W), x.dtype)], axis=1)
        w = jnp.concatenate([w, jnp.zeros((Cout, Cin_p - Cin, 3, 3), w.dtype)], axis=1)
    xf = x.reshape(N, Cin_p, S)
    wf = jnp.transpose(w, (0, 2, 3, 1)).reshape(Cout, 9 * Cin_p)
    masks = make_tap_masks(H, W)
    out = pl.pallas_call(
        make_conv3x3_kernel(H, W, Cin_p),
        out_shape=jax.ShapeDtypeStruct((N, Cout, S), jnp.float32),
        grid=(N,),
        in_specs=[pl.BlockSpec((1, Cin_p, S), lambda n: (n, 0, 0)),
                  _const_spec(wf.shape), _const_spec((Cout, 1)),
                  _const_spec(masks.shape)],
        out_specs=pl.BlockSpec((1, Cout, S), lambda n: (n, 0, 0)),
        scratch_shapes=[pltpu.VMEM((9 * Cin_p, S), jnp.float32)],
        compiler_params=pltpu.CompilerParams(
            dimension_semantics=("parallel",),
            vmem_limit_bytes=VMEM_LIMIT),
    )(xf, wf, b.reshape(Cout, 1), masks)
    return out.reshape(N, Cout, H, W)


def pallas_final(x, p):
    """final = conv3x3(swish(GroupNorm(8, n_channels)(x)))."""
    N, C, H, W = x.shape
    Cout = p["w"].shape[0]
    S = H * W
    xf = x.reshape(N, C, S)
    wf = jnp.transpose(p["w"], (0, 2, 3, 1)).reshape(Cout, 9 * C)
    gm = group_mean_matrix(C, 8, S)
    masks = make_tap_masks(H, W)
    out = pl.pallas_call(
        make_normact_conv_kernel(H, W, C),
        out_shape=jax.ShapeDtypeStruct((N, Cout, S), jnp.float32),
        grid=(N,),
        in_specs=[pl.BlockSpec((1, C, S), lambda n: (n, 0, 0)),
                  _const_spec(gm.shape), _const_spec((C, 1)), _const_spec((C, 1)),
                  _const_spec(wf.shape), _const_spec((Cout, 1)),
                  _const_spec(masks.shape)],
        out_specs=pl.BlockSpec((1, Cout, S), lambda n: (n, 0, 0)),
        scratch_shapes=[pltpu.VMEM((9 * C, S), jnp.float32)],
        compiler_params=pltpu.CompilerParams(
            dimension_semantics=("parallel",),
            vmem_limit_bytes=VMEM_LIMIT),
    )(xf, gm, p["g"].reshape(C, 1), p["b"].reshape(C, 1), wf,
      p["bias"].reshape(Cout, 1), masks)
    return out.reshape(N, Cout, H, W)


def pallas_attention(x, p):
    N, C, H, W = x.shape
    S = H * W
    # attention resolutions are tiny (8x8 here); token-major transpose is cheap.
    xt = jnp.transpose(x.reshape(N, C, S), (0, 2, 1))
    out = pl.pallas_call(
        make_attn_kernel(C),
        out_shape=jax.ShapeDtypeStruct((N, S, C), jnp.float32),
        grid=(N,),
        in_specs=[pl.BlockSpec((1, S, C), lambda n: (n, 0, 0)),
                  _const_spec((C, 3 * C)), _const_spec((1, 3 * C)),
                  _const_spec((C, C)), _const_spec((1, C))],
        out_specs=pl.BlockSpec((1, S, C), lambda n: (n, 0, 0)),
        compiler_params=pltpu.CompilerParams(
            dimension_semantics=("parallel",),
            vmem_limit_bytes=VMEM_LIMIT),
    )(xt, p["wp"].T, p["bp"].reshape(1, 3 * C), p["wo"].T, p["bo"].reshape(1, C))
    return jnp.transpose(out, (0, 2, 1)).reshape(N, C, H, W)


# ----------------------------------------------------------------------------
# XLA helpers shared by both paths (not kernels)
# ----------------------------------------------------------------------------
def xla_conv3x3(x, w, b, stride=1):
    o = lax.conv_general_dilated(x, w, (stride, stride), ((1, 1), (1, 1)),
                                 dimension_numbers=("NCHW", "OIHW", "NCHW"))
    return o + b[None, :, None, None]


def xla_conv1x1(x, w, b):
    o = lax.conv_general_dilated(x, w, (1, 1), ((0, 0), (0, 0)),
                                 dimension_numbers=("NCHW", "OIHW", "NCHW"))
    return o + b[None, :, None, None]


def xla_conv_transpose4x4_s2(x, w, b):
    # PyTorch ConvTranspose2d(C, C, (4,4), stride=2, padding=1); w is (Cin, Cout, 4, 4)
    w_conv = jnp.transpose(jnp.flip(w, (2, 3)), (1, 0, 2, 3))
    o = lax.conv_general_dilated(x, w_conv, (1, 1), ((2, 2), (2, 2)),
                                 lhs_dilation=(2, 2),
                                 dimension_numbers=("NCHW", "OIHW", "NCHW"))
    return o + b[None, :, None, None]


def time_embedding(tp, t, ch):
    half = ch // 8
    freqs = jnp.exp(jnp.arange(half, dtype=jnp.float32)
                    * (-math.log(10000.0) / (half - 1)))
    e = t[:, None] * freqs[None, :]
    e = jnp.concatenate([jnp.sin(e), jnp.cos(e)], axis=1)
    e = swish(e @ tp["w1"].T + tp["b1"])
    return e @ tp["w2"].T + tp["b2"]


# ----------------------------------------------------------------------------
# full UNet forward — Pallas path
# ----------------------------------------------------------------------------
def unet_forward_pallas(params, x, t, n_channels):
    temb = time_embedding(params["time"], t, 4 * n_channels)
    x = pallas_conv3x3(x, params["image_proj"]["w"], params["image_proj"]["b"])
    hs = [x]
    for layer in params["down"]:
        if layer["type"] == "block":
            x = pallas_resblock(x, temb, layer["res"])
            if layer["attn"] is not None:
                x = pallas_attention(x, layer["attn"])
        else:
            # TODO(synk): strided Downsample conv stays on XLA (the tap/mask kernel is stride-1).
            x = xla_conv3x3(x, layer["w"], layer["b"], stride=2)
        hs.append(x)
    mid = params["middle"]
    x = pallas_resblock(x, temb, mid["res1"])
    x = pallas_attention(x, mid["attn"])
    x = pallas_resblock(x, temb, mid["res2"])
    for layer in params["up"]:
        if layer["type"] == "upsample":
            # TODO(synk): ConvTranspose2d upsample stays on XLA.
            x = xla_conv_transpose4x4_s2(x, layer["w"], layer["b"])
        else:
            s = hs.pop()
            x = jnp.concatenate([x, s], axis=1)
            x = pallas_resblock(x, temb, layer["res"])
            if layer["attn"] is not None:
                x = pallas_attention(x, layer["attn"])
    return pallas_final(x, params["final"])


# ----------------------------------------------------------------------------
# pure-JAX reference (mirrors the PyTorch forward, eval mode)
# ----------------------------------------------------------------------------
def ref_group_norm(x, gamma, beta, groups):
    N, C, H, W = x.shape
    xg = x.reshape(N, groups, C // groups, H * W)
    mu = jnp.mean(xg, axis=(2, 3), keepdims=True)
    var = jnp.mean((xg - mu) ** 2, axis=(2, 3), keepdims=True)
    xn = ((xg - mu) * lax.rsqrt(var + GN_EPS)).reshape(N, C, H, W)
    return xn * gamma[None, :, None, None] + beta[None, :, None, None]


def ref_resblock(x, temb, p):
    h = xla_conv3x3(swish(ref_group_norm(x, p["g1"], p["bn1"], 32)), p["w1"], p["bc1"])
    h = h + (swish(temb) @ p["wt"].T + p["bt"])[:, :, None, None]
    h = xla_conv3x3(swish(ref_group_norm(h, p["g2"], p["bn2"], 32)), p["w2"], p["bc2"])
    sc = xla_conv1x1(x, p["ws"], p["bs"]) if "ws" in p else x
    return h + sc


def ref_attention(x, p):
    N, C, H, W = x.shape
    xt = jnp.transpose(x.reshape(N, C, H * W), (0, 2, 1))
    qkv = xt @ p["wp"].T + p["bp"]
    q, k, v = jnp.split(qkv, 3, axis=-1)
    attn = jnp.einsum("bic,bjc->bij", q, k) * (float(C) ** -0.5)
    attn = jax.nn.softmax(attn, axis=-1)
    res = jnp.einsum("bij,bjc->bic", attn, v)
    res = res @ p["wo"].T + p["bo"] + xt
    return jnp.transpose(res, (0, 2, 1)).reshape(N, C, H, W)


def unet_forward_ref(params, x, t, n_channels):
    temb = time_embedding(params["time"], t, 4 * n_channels)
    x = xla_conv3x3(x, params["image_proj"]["w"], params["image_proj"]["b"])
    hs = [x]
    for layer in params["down"]:
        if layer["type"] == "block":
            x = ref_resblock(x, temb, layer["res"])
            if layer["attn"] is not None:
                x = ref_attention(x, layer["attn"])
        else:
            x = xla_conv3x3(x, layer["w"], layer["b"], stride=2)
        hs.append(x)
    mid = params["middle"]
    x = ref_resblock(x, temb, mid["res1"])
    x = ref_attention(x, mid["attn"])
    x = ref_resblock(x, temb, mid["res2"])
    for layer in params["up"]:
        if layer["type"] == "upsample":
            x = xla_conv_transpose4x4_s2(x, layer["w"], layer["b"])
        else:
            s = hs.pop()
            x = jnp.concatenate([x, s], axis=1)
            x = ref_resblock(x, temb, layer["res"])
            if layer["attn"] is not None:
                x = ref_attention(x, layer["attn"])
    fp = params["final"]
    return xla_conv3x3(swish(ref_group_norm(x, fp["g"], fp["b"], 8)), fp["w"], fp["bias"])


# ----------------------------------------------------------------------------
# parameter init (mirrors the PyTorch UNet constructor)
# ----------------------------------------------------------------------------
def init_unet_params(key, image_channels, n_channels, ch_mults, is_attn, n_blocks):
    cnt = [0]

    def nk():
        cnt[0] += 1
        return jax.random.fold_in(key, cnt[0])

    def conv_p(cout, cin, k=3):
        w = jax.random.normal(nk(), (cout, cin, k, k), jnp.float32) / math.sqrt(cin * k * k)
        b = 0.05 * jax.random.normal(nk(), (cout,), jnp.float32)
        return w, b

    def lin_p(cout, cin):
        w = jax.random.normal(nk(), (cout, cin), jnp.float32) / math.sqrt(cin)
        b = 0.05 * jax.random.normal(nk(), (cout,), jnp.float32)
        return w, b

    def gn_p(c):
        g = 1.0 + 0.1 * jax.random.normal(nk(), (c,), jnp.float32)
        b = 0.1 * jax.random.normal(nk(), (c,), jnp.float32)
        return g, b

    def res_p(cin, cout, tch):
        g1, bn1 = gn_p(cin)
        w1, bc1 = conv_p(cout, cin)
        g2, bn2 = gn_p(cout)
        w2, bc2 = conv_p(cout, cout)
        wt, bt = lin_p(cout, tch)
        p = dict(g1=g1, bn1=bn1, w1=w1, bc1=bc1, g2=g2, bn2=bn2, w2=w2, bc2=bc2,
                 wt=wt, bt=bt)
        if cin != cout:
            ws, bs = conv_p(cout, cin, k=1)
            p["ws"], p["bs"] = ws, bs
        return p

    def attn_p(c):
        wp, bp = lin_p(3 * c, c)
        wo, bo = lin_p(c, c)
        return dict(wp=wp, bp=bp, wo=wo, bo=bo)

    tch = n_channels * 4
    params = {}
    w, b = conv_p(n_channels, image_channels)
    params["image_proj"] = dict(w=w, b=b)
    w1, b1 = lin_p(tch, tch // 4)
    w2, b2 = lin_p(tch, tch)
    params["time"] = dict(w1=w1, b1=b1, w2=w2, b2=b2)

    n_res = len(ch_mults)
    down = []
    out_c = in_c = n_channels
    for i in range(n_res):
        out_c = in_c * ch_mults[i]
        for _ in range(n_blocks):
            down.append(dict(type="block", res=res_p(in_c, out_c, tch),
                             attn=attn_p(out_c) if is_attn[i] else None))
            in_c = out_c
        if i < n_res - 1:
            wd, bd = conv_p(in_c, in_c)
            down.append(dict(type="downsample", w=wd, b=bd))
    params["down"] = down

    params["middle"] = dict(res1=res_p(out_c, out_c, tch), attn=attn_p(out_c),
                            res2=res_p(out_c, out_c, tch))

    up = []
    in_c = out_c
    for i in reversed(range(n_res)):
        out_c = in_c
        for _ in range(n_blocks):
            up.append(dict(type="block", res=res_p(in_c + out_c, out_c, tch),
                           attn=attn_p(out_c) if is_attn[i] else None))
        out_c = in_c // ch_mults[i]
        up.append(dict(type="block", res=res_p(in_c + out_c, out_c, tch),
                       attn=attn_p(out_c) if is_attn[i] else None))
        in_c = out_c
        if i > 0:
            # ConvTranspose2d weight layout: (in, out, 4, 4)
            wu = jax.random.normal(nk(), (in_c, in_c, 4, 4), jnp.float32) / math.sqrt(in_c * 16)
            bu = 0.05 * jax.random.normal(nk(), (in_c,), jnp.float32)
            up.append(dict(type="upsample", w=wu, b=bu))
    params["up"] = up

    g, bg = gn_p(n_channels)
    wf, bf = conv_p(image_channels, in_c)
    params["final"] = dict(g=g, b=bg, w=wf, bias=bf)
    return params


# ----------------------------------------------------------------------------
# demo / correctness check
# ----------------------------------------------------------------------------
if __name__ == "__main__":
    key = jax.random.PRNGKey(0)
    N, image_channels, H, W = 2, 3, 16, 16
    n_channels = 32               # smallest size compatible with GroupNorm(32, C)
    ch_mults = (1, 2)
    is_attn = (False, True)
    n_blocks = 1

    kx, kt, kp = jax.random.split(key, 3)
    x = jax.random.normal(kx, (N, image_channels, H, W), jnp.float32)
    t = jax.random.uniform(kt, (N,), jnp.float32, 0.0, 1000.0)
    params = init_unet_params(kp, image_channels, n_channels, ch_mults, is_attn, n_blocks)

    out = unet_forward_pallas(params, x, t, n_channels)
    out = jax.block_until_ready(out)
    assert out.shape == (N, image_channels, H, W)

    ref = jax.block_until_ready(unet_forward_ref(params, x, t, n_channels))
    if not jnp.allclose(out, ref, atol=5e-3, rtol=5e-3):
        err = float(jnp.max(jnp.abs(out - ref)))
        raise AssertionError(f"Pallas UNet output mismatch, max abs err = {err}")

    print("KERNEL_OK")
</pallas_src>

<mosaic_0001>
module attributes {stable_mosaic.version = 11 : i64} {
  func.func @kernel(%arg0: i32, %arg1: memref<1x8x256xf32, #tpu.memory_space<vmem>>, %arg2: memref<32x72xf32, #tpu.memory_space<vmem>>, %arg3: memref<32x1xf32, #tpu.memory_space<vmem>>, %arg4: memref<9x256xf32, #tpu.memory_space<vmem>>, %arg5: memref<1x32x256xf32, #tpu.memory_space<vmem>>, %arg6: memref<72x256xf32, #tpu.memory_space<vmem>>) attributes {dimension_semantics = [#tpu.dimension_semantics<parallel>], iteration_bounds = array<i64: 2>, scalar_prefetch = 0 : i64, scratch_operands = 1 : i64, tpu.core_type = #tpu.core_type<tc>, window_params = [{transform_indices = @transform_0, window_bounds = array<i64: 1, 8, 256>}, {pipeline_mode = #tpu.pipeline_mode<synchronous>, transform_indices = @transform_1, window_bounds = array<i64: 32, 72>}, {pipeline_mode = #tpu.pipeline_mode<synchronous>, transform_indices = @transform_2, window_bounds = array<i64: 32, 1>}, {pipeline_mode = #tpu.pipeline_mode<synchronous>, transform_indices = @transform_3, window_bounds = array<i64: 9, 256>}, {transform_indices = @transform_4, window_bounds = array<i64: 1, 32, 256>}]} {
    %c0 = arith.constant 0 : index
    %c0_0 = arith.constant 0 : index
    %c0_1 = arith.constant 0 : index
    %0 = vector.load %arg1[%c0, %c0_0, %c0_1] : memref<1x8x256xf32, #tpu.memory_space<vmem>>, vector<1x8x256xf32>
    %1 = vector.shape_cast %0 : vector<1x8x256xf32> to vector<8x256xf32>
    %cst = arith.constant 0.000000e+00 : f32
    %2 = vector.broadcast %cst : f32 to vector<8x17xf32>
    %c0_2 = arith.constant 0 : index
    %c0_3 = arith.constant 0 : index
    %3 = vector.load %arg6[%c0_2, %c0_3] : memref<72x256xf32, #tpu.memory_space<vmem>>, vector<8x17xf32>
    tpu.vector_store %arg6[%c0_2, %c0_3], %2 {strides = array<i32>} : memref<72x256xf32, #tpu.memory_space<vmem>>, vector<8x17xf32>,
    %4 = vector.extract_strided_slice %1 {offsets = [0, 0], sizes = [8, 239], strides = [1, 1]} : vector<8x256xf32> to vector<8x239xf32>
    %c0_4 = arith.constant 0 : index
    %c17 = arith.constant 17 : index
    %5 = vector.load %arg4[%c0_4, %c17] : memref<9x256xf32, #tpu.memory_space<vmem>>, vector<1x239xf32>
    %6 = vector.broadcast %5 : vector<1x239xf32> to vector<8x239xf32>
    %7 = arith.mulf %4, %6 : vector<8x239xf32>
    %c0_5 = arith.constant 0 : index
    %c17_6 = arith.constant 17 : index
    %8 = vector.load %arg6[%c0_5, %c17_6] : memref<72x256xf32, #tpu.memory_space<vmem>>, vector<8x239xf32>
    tpu.vector_store %arg6[%c0_5, %c17_6], %7 {strides = array<i32>} : memref<72x256xf32, #tpu.memory_space<vmem>>, vector<8x239xf32>,
    %cst_7 = arith.constant 0.000000e+00 : f32
    %9 = vector.broadcast %cst_7 : f32 to vector<8x16xf32>
    %c8 = arith.constant 8 : index
    %c0_8 = arith.constant 0 : index
    %10 = vector.load %arg6[%c8, %c0_8] : memref<72x256xf32, #tpu.memory_space<vmem>>, vector<8x16xf32>
    tpu.vector_store %arg6[%c8, %c0_8], %9 {strides = array<i32>} : memref<72x256xf32, #tpu.memory_space<vmem>>, vector<8x16xf32>,
    %11 = vector.extract_strided_slice %1 {offsets = [0, 0], sizes = [8, 240], strides = [1, 1]} : vector<8x256xf32> to vector<8x240xf32>
    %c1 = arith.constant 1 : index
    %c16 = arith.constant 16 : index
    %12 = vector.load %arg4[%c1, %c16] : memref<9x256xf32, #tpu.memory_space<vmem>>, vector<1x240xf32>
    %13 = vector.broadcast %12 : vector<1x240xf32> to vector<8x240xf32>
    %14 = arith.mulf %11, %13 : vector<8x240xf32>
    %c8_9 = arith.constant 8 : index
    %c16_10 = arith.constant 16 : index
    %15 = vector.load %arg6[%c8_9, %c16_10] : memref<72x256xf32, #tpu.memory_space<vmem>>, vector<8x240xf32>
    tpu.vector_store %arg6[%c8_9, %c16_10], %14 {strides = array<i32>} : memref<72x256xf32, #tpu.memory_space<vmem>>, vector<8x240xf32>,
    %cst_11 = arith.constant 0.000000e+00 : f32
    %16 = vector.broadcast %cst_11 : f32 to vector<8x15xf32>
    %c16_12 = arith.constant 16 : index
    %c0_13 = arith.constant 0 : index
    %17 = vector.load %arg6[%c16_12, %c0_13] : memref<72x256xf32, #tpu.memory_space<vmem>>, vector<8x15xf32>
    tpu.vector_store %arg6[%c16_12, %c0_13], %16 {strides = array<i32>} : memref<72x256xf32, #tpu.memory_space<vmem>>, vector<8x15xf32>,
    %18 = vector.extract_strided_slice %1 {offsets = [0, 0], sizes = [8, 241], strides = [1, 1]} : vector<8x256xf32> to vector<8x241xf32>
    %c2 = arith.constant 2 : index
    %c15 = arith.constant 15 : index
    %19 = vector.load %arg4[%c2, %c15] : memref<9x256xf32, #tpu.memory_space<vmem>>, vector<1x241xf32>
    %20 = vector.broadcast %19 : vector<1x241xf32> to vector<8x241xf32>
    %21 = arith.mulf %18, %20 : vector<8x241xf32>
    %c16_14 = arith.constant 16 : index
    %c15_15 = arith.constant 15 : index
    %22 = vector.load %arg6[%c16_14, %c15_15] : memref<72x256xf32, #tpu.memory_space<vmem>>, vector<8x241xf32>
    tpu.vector_store %arg6[%c16_14, %c15_15], %21 {strides = array<i32>} : memref<72x256xf32, #tpu.memory_space<vmem>>, vector<8x241xf32>,
    %cst_16 = arith.constant 0.000000e+00 : f32
    %23 = vector.broadcast %cst_16 : f32 to vector<8x1xf32>
    %c24 = arith.constant 24 : index
    %c0_17 = arith.constant 0 : index
    %24 = vector.load %arg6[%c24, %c0_17] : memref<72x256xf32, #tpu.memory_space<vmem>>, vector<8x1xf32>
    tpu.vector_store %arg6[%c24, %c0_17], %23 {strides = array<i32>} : memref<72x256xf32, #tpu.memory_space<vmem>>, vector<8x1xf32>,
    %25 = vector.extract_strided_slice %1 {offsets = [0, 0], sizes = [8, 255], strides = [1, 1]} : vector<8x256xf32> to vector<8x255xf32>
    %c3 = arith.constant 3 : index
    %c1_18 = arith.constant 1 : index
    %26 = vector.load %arg4[%c3, %c1_18] : memref<9x256xf32, #tpu.memory_space<vmem>>, vector<1x255xf32>
    %27 = vector.broadcast %26 : vector<1x255xf32> to vector<8x255xf32>
    %28 = arith.mulf %25, %27 : vector<8x255xf32>
    %c24_19 = arith.constant 24 : index
    %c1_20 = arith.constant 1 : index
    %29 = vector.load %arg6[%c24_19, %c1_20] : memref<72x256xf32, #tpu.memory_space<vmem>>, vector<8x255xf32>
    tpu.vector_store %arg6[%c24_19, %c1_20], %28 {strides = array<i32>} : memref<72x256xf32, #tpu.memory_space<vmem>>, vector<8x255xf32>,
    %c4 = arith.constant 4 : index
    %c0_21 = arith.constant 0 : index
    %30 = vector.load %arg4[%c4, %c0_21] : memref<9x256xf32, #tpu.memory_space<vmem>>, vector<1x256xf32>
    %31 = vector.broadcast %30 : vector<1x256xf32> to vector<8x256xf32>
    %32 = arith.mulf %1, %31 : vector<8x256xf32>
    %c32 = arith.constant 32 : index
    %c0_22 = arith.constant 0 : index
    %33 = vector.load %arg6[%c32, %c0_22] : memref<72x256xf32, #tpu.memory_space<vmem>>, vector<8x256xf32>
    tpu.vector_store %arg6[%c32, %c0_22], %32 {strides = array<i32>} : memref<72x256xf32, #tpu.memory_space<vmem>>, vector<8x256xf32>,
    %34 = vector.extract_strided_slice %1 {offsets = [0, 1], sizes = [8, 255], strides = [1, 1]} : vector<8x256xf32> to vector<8x255xf32>
    %c5 = arith.constant 5 : index
    %c0_23 = arith.constant 0 : index
    %35 = vector.load %arg4[%c5, %c0_23] : memref<9x256xf32, #tpu.memory_space<vmem>>, vector<1x255xf32>
    %36 = vector.broadcast %35 : vector<1x255xf32> to vector<8x255xf32>
    %37 = arith.mulf %34, %36 : vector<8x255xf32>
    %c40 = arith.constant 40 : index
    %c0_24 = arith.constant 0 : index
    %38 = vector.load %arg6[%c40, %c0_24] : memref<72x256xf32, #tpu.memory_space<vmem>>, vector<8x255xf32>
    tpu.vector_store %arg6[%c40, %c0_24], %37 {strides = array<i32>} : memref<72x256xf32, #tpu.memory_space<vmem>>, vector<8x255xf32>,
    %cst_25 = arith.constant 0.000000e+00 : f32
    %39 = vector.broadcast %cst_25 : f32 to vector<8x1xf32>
    %c40_26 = arith.constant 40 : index
    %c255 = arith.constant 255 : index
    %40 = vector.load %arg6[%c40_26, %c255] : memref<72x256xf32, #tpu.memory_space<vmem>>, vector<8x1xf32>
    tpu.vector_store %arg6[%c40_26, %c255], %39 {strides = array<i32>} : memref<72x256xf32, #tpu.memory_space<vmem>>, vector<8x1xf32>,
    %41 = vector.extract_strided_slice %1 {offsets = [0, 15], sizes = [8, 241], strides = [1, 1]} : vector<8x256xf32> to vector<8x241xf32>
    %c6 = arith.constant 6 : index
    %c0_27 = arith.constant 0 : index
    %42 = vector.load %arg4[%c6, %c0_27] : memref<9x256xf32, #tpu.memory_space<vmem>>, vector<1x241xf32>
    %43 = vector.broadcast %42 : vector<1x241xf32> to vector<8x241xf32>
    %44 = arith.mulf %41, %43 : vector<8x241xf32>
    %c48 = arith.constant 48 : index
    %c0_28 = arith.constant 0 : index
    %45 = vector.load %arg6[%c48, %c0_28] : memref<72x256xf32, #tpu.memory_space<vmem>>, vector<8x241xf32>
    tpu.vector_store %arg6[%c48, %c0_28], %44 {strides = array<i32>} : memref<72x256xf32, #tpu.memory_space<vmem>>, vector<8x241xf32>,
    %cst_29 = arith.constant 0.000000e+00 : f32
    %46 = vector.broadcast %cst_29 : f32 to vector<8x15xf32>
    %c48_30 = arith.constant 48 : index
    %c241 = arith.constant 241 : index
    %47 = vector.load %arg6[%c48_30, %c241] : memref<72x256xf32, #tpu.memory_space<vmem>>, vector<8x15xf32>
    tpu.vector_store %arg6[%c48_30, %c241], %46 {strides = array<i32>} : memref<72x256xf32, #tpu.memory_space<vmem>>, vector<8x15xf32>,
    %48 = vector.extract_strided_slice %1 {offsets = [0, 16], sizes = [8, 240], strides = [1, 1]} : vector<8x256xf32> to vector<8x240xf32>
    %c7 = arith.constant 7 : index
    %c0_31 = arith.constant 0 : index
    %49 = vector.load %arg4[%c7, %c0_31] : memref<9x256xf32, #tpu.memory_space<vmem>>, vector<1x240xf32>
    %50 = vector.broadcast %49 : vector<1x240xf32> to vector<8x240xf32>
    %51 = arith.mulf %48, %50 : vector<8x240xf32>
    %c56 = arith.constant 56 : index
    %c0_32 = arith.constant 0 : index
    %52 = vector.load %arg6[%c56, %c0_32] : memref<72x256xf32, #tpu.memory_space<vmem>>, vector<8x240xf32>
    tpu.vector_store %arg6[%c56, %c0_32], %51 {strides = array<i32>} : memref<72x256xf32, #tpu.memory_space<vmem>>, vector<8x240xf32>,
    %cst_33 = arith.constant 0.000000e+00 : f32
    %53 = vector.broadcast %cst_33 : f32 to vector<8x16xf32>
    %c56_34 = arith.constant 56 : index
    %c240 = arith.constant 240 : index
    %54 = vector.load %arg6[%c56_34, %c240] : memref<72x256xf32, #tpu.memory_space<vmem>>, vector<8x16xf32>
    tpu.vector_store %arg6[%c56_34, %c240], %53 {strides = array<i32>} : memref<72x256xf32, #tpu.memory_space<vmem>>, vector<8x16xf32>,
    %55 = vector.extract_strided_slice %1 {offsets = [0, 17], sizes = [8, 239], strides = [1, 1]} : vector<8x256xf32> to vector<8x239xf32>
    %c8_35 = arith.constant 8 : index
    %c0_36 = arith.constant 0 : index
    %56 = vector.load %arg4[%c8_35, %c0_36] : memref<9x256xf32, #tpu.memory_space<vmem>>, vector<1x239xf32>
    %57 = vector.broadcast %56 : vector<1x239xf32> to vector<8x239xf32>
    %58 = arith.mulf %55, %57 : vector<8x239xf32>
    %c64 = arith.constant 64 : index
    %c0_37 = arith.constant 0 : index
    %59 = vector.load %arg6[%c64, %c0_37] : memref<72x256xf32, #tpu.memory_space<vmem>>, vector<8x239xf32>
    tpu.vector_store %arg6[%c64, %c0_37], %58 {strides = array<i32>} : memref<72x256xf32, #tpu.memory_space<vmem>>, vector<8x239xf32>,
    %cst_38 = arith.constant 0.000000e+00 : f32
    %60 = vector.broadcast %cst_38 : f32 to vector<8x17xf32>
    %c64_39 = arith.constant 64 : index
    %c239 = arith.constant 239 : index
    %61 = vector.load %arg6[%c64_39, %c239] : memref<72x256xf32, #tpu.memory_space<vmem>>, vector<8x17xf32>
    tpu.vector_store %arg6[%c64_39, %c239], %60 {strides = array<i32>} : memref<72x256xf32, #tpu.memory_space<vmem>>, vector<8x17xf32>,
    %c0_40 = arith.constant 0 : index
    %c0_41 = arith.constant 0 : index
    %62 = vector.load %arg2[%c0_40, %c0_41] : memref<32x72xf32, #tpu.memory_space<vmem>>, vector<32x72xf32>
    %c0_42 = arith.constant 0 : index
    %c0_43 = arith.constant 0 : index
    %63 = vector.load %arg6[%c0_42, %c0_43] : memref<72x256xf32, #tpu.memory_space<vmem>>, vector<72x256xf32>
    %cst_44 = arith.constant dense<0.000000e+00> : vector<32x256xf32>
    %64 = tpu.matmul %62, %63, %cst_44 {dimension_numbers = #tpu.dot_dimension_numbers<[1], [0], [0], [1], [0, 0, 1, 1], [], []>, precision = #tpu.contract_precision<fp32>} : vector<32x72xf32>, vector<72x256xf32>, vector<32x256xf32> -> vector<32x256xf32>
    %c0_45 = arith.constant 0 : index
    %c0_46 = arith.constant 0 : index
    %65 = vector.load %arg3[%c0_45, %c0_46] : memref<32x1xf32, #tpu.memory_space<vmem>>, vector<32x1xf32>
    %66 = vector.broadcast %65 : vector<32x1xf32> to vector<32x256xf32>
    %67 = arith.addf %64, %66 : vector<32x256xf32>
    %c0_47 = arith.constant 0 : index
    %c0_48 = arith.constant 0 : index
    %c0_49 = arith.constant 0 : index
    %68 = vector.load %arg5[%c0_47, %c0_48, %c0_49] : memref<1x32x256xf32, #tpu.memory_space<vmem>>, vector<1x32x256xf32>
    %69 = vector.shape_cast %68 : vector<1x32x256xf32> to vector<32x256xf32>
    %70 = vector.shape_cast %67 : vector<32x256xf32> to vector<1x32x256xf32>
    tpu.vector_store %arg5[%c0_47, %c0_48, %c0_49], %70 {strides = array<i32>} : memref<1x32x256xf32, #tpu.memory_space<vmem>>, vector<1x32x256xf32>,
    return
  }
  func.func @transform_0(%arg0: i32) -> (i32, i32, i32) {
    %c0_i32 = arith.constant 0 : i32
    %c0_i32_0 = arith.constant 0 : i32
    %c0_i32_1 = arith.constant 0 : i32
    return %arg0, %c0_i32, %c0_i32_0 : i32, i32, i32
  }
  func.func @transform_1(%arg0: i32) -> (i32, i32) {
    %c0_i32 = arith.constant 0 : i32
    %c0_i32_0 = arith.constant 0 : i32
    %c0_i32_1 = arith.constant 0 : i32
    return %c0_i32, %c0_i32_0 : i32, i32
  }
  func.func @transform_2(%arg0: i32) -> (i32, i32) {
    %c0_i32 = arith.constant 0 : i32
    %c0_i32_0 = arith.constant 0 : i32
    %c0_i32_1 = arith.constant 0 : i32
    return %c0_i32, %c0_i32_0 : i32, i32
  }
  func.func @transform_3(%arg0: i32) -> (i32, i32) {
    %c0_i32 = arith.constant 0 : i32
    %c0_i32_0 = arith.constant 0 : i32
    %c0_i32_1 = arith.constant 0 : i32
    return %c0_i32, %c0_i32_0 : i32, i32
  }
  func.func @transform_4(%arg0: i32) -> (i32, i32, i32) {
    %c0_i32 = arith.constant 0 : i32
    %c0_i32_0 = arith.constant 0 : i32
    %c0_i32_1 = arith.constant 0 : i32
    return %arg0, %c0_i32, %c0_i32_0 : i32, i32, i32
  }
}

</mosaic_0001>

<bundles_post_ra>
// kernel: tpu_custom_call.1
= control target key start
LH: loop header
LB: loop body
LE: loop exit
PB: predicated region body
PF: predicated region fallthrough
CT: control target
= control target key end

     0   :  { %9 = vsyncpa [#allocation4], 0  ;;  %s2515_s0 = inlined_call_operand.vmem [shape: f32[2,8,256], index: 0, kind: input, shape index: {}]   ;;  %s2516_s1 = inlined_call_operand.hbm [shape: f32[32,72], index: 1, kind: input, shape index: {}]   ;;  %s2517_s2 = inlined_call_operand.vmem [shape: f32[32,1], index: 2, kind: input, shape index: {}]   ;;  %s2518_s3 = inlined_call_operand.hbm [shape: f32[9,256], index: 3, kind: input, shape index: {}]   ;;  %s2519_s4 = inlined_call_operand.hbm [shape: f32[2,32,256], index: 4, kind: output, shape index: {}]  }
   0x1   :  { %10 = vsyncpa [#allocation7], 0 }
   0x2   :  { %11 = vsyncpa [#allocation5], 0 }
   0x3   :  { %13 = vsyncpa [#allocation5 + $0x1], 0  ;;  %s1911_s15 = smov 0   ;;  %s1913_s16 = smov 0  }
   0x4   :  { %s1915_s17 = smov 0   ;;  %s1917_s18 = smov 0  }
   0x5 LB: > { %s1932_s19 = sadd.s32 4294967295, %s1866_s18   ;;  %s1501_s20 = sadd.s32 4294967294, %s1866_s18   ;;  %s1866_s18 = sphi %s1917_s18, %s2579_s18   ;;  %s1862_s17 = sphi %s1915_s17, %s2578_s17   ;;  %s1858_s16 = sphi %s1913_s16, %s2577_s16   ;;  %s1854_s15 = sphi %s1911_s15, %s2576_s15  }
   0x6   : > { %s1936_s21 = sadd.s32 1, %s1866_s18   ;;  %s115_s22 = sadd.s32 1, %s1862_s17 }
   0x7   : > { %s112_s23 = ssub.s32 %s1866_s18, %s1936_s21  ;;  %p125_p0 = scmp.ne.s32.totalorder %s1862_s17, %s1858_s16 }
   0x8   : > { %p113_p1 = scmp.eq.s32.totalorder %s112_s23, 0  ;;  %p126_p2 = scmp.eq.s32.totalorder %s1932_s19, 1 }
   0x9   : > { %p131_p3 = scmp.ne.s32.totalorder %s1858_s16, %s1854_s15  ;;  %p132_p4 = scmp.eq.s32.totalorder %s1501_s20, 1 }
   0xa   : > { %s1947_s24 = scalar_select %p113_p1, %s1862_s17, %s115_s22  }
   0xb   : > { %p1949_p5 = por %p126_p2, %p125_p0  ;;  %p1953_p6 = por %p132_p4, %p131_p3 }
   0xc   : > { %p1502_p7 = scmp.ge.s32.totalorder %s1866_s18, 1  ;;  %p139_p8 = scmp.lt.s32.totalorder %s1866_s18, 3 }
   0xd   : > { %s2540_s25 = scalar_select %p1949_p5, 1, 0 }
   0xe   : > { %s2541_s26 = scalar_select %p1953_p6, 1, 0 }
   0xf   : > { %p2520_p9 = scmp.eq.s32.totalorder %s1932_s19, 0  ;;  %p1960_p10 = pnand %p1502_p7, %p139_p8 }
  0x10   : > { %s1868_s28 = smov [#allocation3]   ;;  %s1869_s5 = smov [#allocation6]  }
  0x11   : > { %s2542_s27 = scalar_select %p1960_p10, 1, 0 }
  0x12   : > { %s151_s29 = sshll.u32 %s1868_s28, 4  ;;  %p1673_p11 = pneg %p1960_p10  ;;  %s152_s29 = int_to_ptr.vmem [resolvable:$true] %s151_s29 }
  0x13   : > { %s167_s6 = sshll.u32 %s1869_s5, 4  ;;  %s1740_s9 = scalar_lea.hbm %s2516_s1, 512  ;;  %s1972_s6 = int_to_ptr.vmem [resolvable:$true] %s167_s6 }
  0x14   : > { %p1968_p12 = pnand %p2520_p9, %p1673_p11  ;;  %p1741_p13 = scmp.ne.s32.totalorder %s2516_s1, %s1740_s9 }
  0x15   : > { %p1747_p3 = scmp.lt.u32.totalorder %s1740_s9, %s2516_s1 }
  0x16   : > { %p1742_p0 = pneg %p1968_p12 }
  0x18   : > { %p1743_p1 = pnand %p1742_p0, %p1741_p13 }
  0x1a   : > { %p1744_p2 = pneg %p1743_p1 }
  0x1c   : > { %p1749_p4 = pnand %p1747_p3, %p1744_p2 }
  0x1e   : > { %1752 = shalt.err (!%p1749_p4)
}
  0x1f   : > { %s1753_s14 = scalar_lea.vmem %s152_s29, 512  ;;  %p1761_p9 = scmp.lt.s32.totalorder %s152_s29, %s152_s29 }
  0x20   : > { %p1754_p7 = scmp.ne.s32.totalorder %s152_s29, %s1753_s14  ;;  %p1762_p6 = scmp.lt.s32.totalorder %s1753_s14, %s1753_s14 }
  0x22   : > { %p1756_p8 = pnand %p1754_p7, %p1742_p0  ;;  %p1763_p5 = por %p1762_p6, %p1761_p9 }
  0x24   : > { %p1757_p11 = pneg %p1756_p8 }
  0x26   : > { %p1764_p10 = pnand %p1763_p5, %p1757_p11 }
  0x28   : > { %1767 = shalt.err (!%p1764_p10)
}
  0x29   : > { %s1870_s20 = smov 128   ;;  %s1871_s22 = smov 8  }
  0x2a   : > { %1676 = dma.hbm_to_vmem [thread:$0]  (!%p1968_p12), %s2516_s1, 512, %s152_s29, [#allocation4], %s1870_s20, %s1870_s20, %s1871_s22  }
  0x2b   : > { %s1768_s8 = scalar_lea.hbm %s2518_s3, 512 }
  0x2c   : > { %p1769_p13 = scmp.ne.s32.totalorder %s2518_s3, %s1768_s8  ;;  %p1775_p9 = scmp.lt.u32.totalorder %s1768_s8, %s2518_s3 }
  0x2e   : > { %p1771_p5 = pnand %p1769_p13, %p1742_p0 }
  0x30   : > { %p1772_p6 = pneg %p1771_p5 }
  0x32   : > { %p1777_p10 = pnand %p1775_p9, %p1772_p6 }
  0x34   : > { %1780 = shalt.err (!%p1777_p10)
}
  0x35   : > { %s1781_s29 = scalar_lea.vmem %s1972_s6, 512  ;;  %p1789_p4 = scmp.lt.s32.totalorder %s1972_s6, %s1972_s6 }
  0x36   : > { %p1782_p1 = scmp.ne.s32.totalorder %s1972_s6, %s1781_s29  ;;  %p1790_p7 = scmp.lt.s32.totalorder %s1781_s29, %s1781_s29 }
  0x38   : > { %p1784_p2 = pnand %p1782_p1, %p1742_p0  ;;  %p1791_p8 = por %p1790_p7, %p1789_p4 }
  0x3a   : > { %p1785_p3 = pneg %p1784_p2 }
  0x3c   : > { %p1792_p11 = pnand %p1791_p8, %p1785_p3 }
  0x3e   : > { %1795 = shalt.err (!%p1792_p11)
}
  0x3f   : > { %s1872_s13 = smov 256   ;;  %s1873_s14 = smov 16  }
  0x40   : > { %1679 = dma.hbm_to_vmem [thread:$0]  (!%p1968_p12), %s2518_s3, 512, %s1972_s6, [#allocation7], %s1872_s13, %s1872_s13, %s1873_s14  }
  0x41   : > { %p2544_p13 = scmp.ne.s32.totalorder %s2542_s27, 0 }
  0x43   : > { %191 = sbr.rel (%p2544_p13) target bundleno = 648 (0x288), region = 36 }
  0x4a   : > { %p2545_p0 = scmp.eq.s32.totalorder %s1932_s19, 0 }
  0x4c   : > { %1841 = dma.done.wait (%p2545_p0), [#allocation4], 512   ;;  %p2546_p5 = pmov %p2545_p0 }
  0x4d   : > { %p2547_p6 = pmov %p2545_p0 }
  0x4e   : > { %1843 = vsyncadd (%p2546_p5), [#allocation4], 4294966784 }
  0x4f   : > { %1845 = dma.done.wait (%p2547_p6), [#allocation7], 512   ;;  %p2548_p9 = pmov %p2545_p0 }
  0x50   : > { %v232_v0 = vlaneseq  ;;  %v265_v4 = vld [vmem:[#allocation6 + $0x1] ss:$8 sm:$0x3]  ;;  %v230_v5 = vld [vmem:[#allocation6] ss:$8 sm:$0x3] }
  0x51   : > { %1847 = vsyncadd (%p2548_p9), [#allocation7], 4294966784  ;;  %s1874_s27 = smov 112   ;;  %s1875_s30 = smov 111   ;;  %vm332_vm0 = vcmask 7168   ;;  %v2525_v11 = vmov 0.0  }
  0x52   : > { %v233_v1 = vshrl.u32 %v232_v0, 7  ;;  %v300_v10 = vld [vmem:[#allocation6 + $0x2] ss:$8 sm:$0x3]  ;;  %333 = vst.msk [vmem:[#allocation2 + $0x30] sm:$0xff] %vm332_vm0, %v2525_v11  ;;  %657 = vmatprep.mubr.f32.mxu1 %v2525_v11  ;;  %1100 = vmatprep.mubr.f32.mxu0 %v2525_v11  ;;  %vm297_vm1 = vcmask 121856  }
  0x53   : > { %v335_v14 = vld [vmem:[#allocation6 + $0x3] ss:$8 sm:$0x3]  ;;  %298 = vst.msk [vmem:[#allocation2 + $0x20] sm:$0xff] %vm297_vm1, %v2525_v11  ;;  %s1877_s6 = smov 113   ;;  %vm262_vm2 = vcmask 130048  }
  0x54   : > { %v2031_v2 = vsub.s32 0, %v233_v1  ;;  %v2033_v3 = vsub.s32 1, %v233_v1  ;;  %v385_v17 = vld [vmem:[#allocation6 + $0x5] ss:$8 sm:$0x3]  ;;  %263 = vst.msk [vmem:[#allocation2 + $0x10] sm:$0xff] %vm262_vm2, %v2525_v11 }
  0x55   : > { %s1878_s23 = smov 127   ;;  %v418_v20 = vld [vmem:[#allocation6 + $0x6] ss:$8 sm:$0x3]  ;;  %vm228_vm3 = vcmask 138240   ;;  %s1879_s28 = smov 1  }
  0x56   : > { %v270_v6 = vrot.slane %v265_v4, %v2031_v2  ;;  %v235_v7 = vrot.slane %v230_v5, %v2031_v2  ;;  %v274_v8 = vrot.slane %v265_v4, %v2033_v3  ;;  %v239_v9 = vrot.slane %v230_v5, %v2033_v3  ;;  %229 = vst.msk [vmem:[#allocation2] sm:$0xff] %vm228_vm3, %v2525_v11  ;;  %v451_v23 = vld [vmem:[#allocation6 + $0x7] ss:$8 sm:$0x3]  ;;  %s1880_s5 = smov 15   ;;  %s1881_s7 = smov 16  }
  0x57   : > { %v309_v12 = vrot.slane %v300_v10, %v2033_v3  ;;  %v305_v13 = vrot.slane %v300_v10, %v2031_v2  ;;  %v344_v15 = vrot.slane %v335_v14, %v2033_v3  ;;  %v340_v16 = vrot.slane %v335_v14, %v2031_v2  ;;  %v484_v26 = vld [vmem:[#allocation6 + $0x10] ss:$8 sm:$0x3]  ;;  %s1882_s8 = smov 17   ;;  %p221_p12 = scmp.lt.s32.totalorder %s1932_s19, 1 }
  0x58   : > { %275 = vrot.lane.b32.xlu1 %v270_v6, %s1874_s27  ;;  %240 = vrot.lane.b32.xlu0 %v235_v7, %s1875_s30  ;;  %v394_v18 = vrot.slane %v385_v17, %v2033_v3  ;;  %v390_v19 = vrot.slane %v385_v17, %v2031_v2  ;;  %v427_v21 = vrot.slane %v418_v20, %v2033_v3  ;;  %vm244_vm4 = vcmask 908288   ;;  %v368_v39 = vld [vmem:[#allocation6 + $0x4] ss:$8 sm:$0x3]  ;;  %v539_v14 = vld [vmem:[%s2517_s2 + $0x8] sm:$0xff]  ;;  %p2574_p1 = scmp.ne.s32.totalorder %s2540_s25, 0 }
  0x59   : > { %v423_v22 = vrot.slane %v418_v20, %v2031_v2  ;;  %v460_v24 = vrot.slane %v451_v23, %v2033_v3  ;;  %v456_v25 = vrot.slane %v451_v23, %v2031_v2  ;;  %v493_v27 = vrot.slane %v484_v26, %v2033_v3  ;;  %s222_s9 = scalar_select %p221_p12, %s1932_s19, 1  ;;  %v541_v17 = vld [vmem:[%s2517_s2 + $0x18] sm:$0xff] }
  0x5a   : > { %v489_v28 = vrot.slane %v484_v26, %v2031_v2  ;;  %vm279_vm5 = vcmask 916480   ;;  %vm314_vm6 = vcmask 924672   ;;  %v373_v42 = vrot.slane %v368_v39, %v2031_v2  ;;  %s1884_s14 = smov [#allocation8]  }
  0x5b   : > { %s1517_s10 = sshll.u32 %s222_s9, 4  ;;  %vm349_vm7 = vcmask 1039360   ;;  %v377_v54 = vrot.slane %v368_v39, %v2033_v3  ;;  %vm259_vm8 = vcmask 1047688   ;;  %vm294_vm9 = vcmask 1047680   ;;  %s1518_s9 = sshll.u32 %s1932_s19, 10 }
  0x5c   : > { %277 = vrot.lane.b32.xlu1 %v274_v8, %s1874_s27  ;;  %242 = vrot.lane.b32.xlu0 %v239_v9, %s1875_s30  ;;  %s225_s29 = scalar_lea.vmem %s2515_s0, %s1517_s10  ;;  %vm562_vm10 = vcmask 588800   ;;  %vm329_vm11 = vcmask 1047672   ;;  %vm364_vm12 = vcmask 1047560   ;;  %vm415_vm13 = vcmask 1048568   ;;  %s1800_s20 = sshll.u32 %s1884_s14, 4  ;;  %s1801_s20 = int_to_ptr.vmem [resolvable:$false] %s1800_s20 }
  0x5d   : > { %v227_v31 = vld [vmem:[%s225_s29 + $0x8] sm:$0xff]  ;;  %v226_v32 = vld [vmem:[%s225_s29] sm:$0xff]  ;;  %vm481_vm14 = vcmask 1048448   ;;  %vm448_vm15 = vcmask 1048456   ;;  %s2465_s29 = scalar_lea.hbm %s2519_s4, %s1518_s9  ;;  %s1802_s22 = scalar_lea.vmem %s1801_s20, 2048 }
  0x5e   : > { %v2083_v45 = vmul.f32 %v373_v42, %v226_v32  ;;  %v2092_v57 = vmul.f32 %v377_v54, %v227_v31 }
  0x60   : > { %312 = vrot.lane.b32.xlu1 %v309_v12, %s1877_s6  ;;  %310 = vrot.lane.b32.xlu0 %v305_v13, %s1877_s6  ;;  %v538_v13 = vld [vmem:[%s2517_s2] sm:$0xff] }
  0x64   : > { %347 = vrot.lane.b32.xlu1 %v344_v15, %s1878_s23  ;;  %345 = vrot.lane.b32.xlu0 %v340_v16, %s1878_s23  ;;  %v1883_v15 = vmov 0   ;;  %v540_v16 = vld [vmem:[%s2517_s2 + $0x10] sm:$0xff] }
  0x65   : > { %1738 = vset.pattern.permute.xlu0 %v1883_v15  ;;  %1739 = vset.pattern.permute.xlu1 %v1883_v15 }
  0x68   : > { %397 = vrot.lane.b32.xlu1 %v394_v18, %s1879_s28  ;;  %395 = vrot.lane.b32.xlu0 %v390_v19, %s1879_s28 }
  0x6c   : > { %430 = vrot.lane.b32.xlu1 %v427_v21, %s1880_s5  ;;  %428 = vrot.lane.b32.xlu0 %v423_v22, %s1880_s5  ;;  %v516_v21 = vld [vmem:[#allocation3] sm:$0xff] }
  0x70   : > { %463 = vrot.lane.b32.xlu1 %v460_v24, %s1881_s7  ;;  %461 = vrot.lane.b32.xlu0 %v456_v25, %s1881_s7  ;;  %v564_v25 = vsel %vm562_vm10, %v516_v21, 0 }
  0x74   : > { %496 = vrot.lane.b32.xlu1 %v493_v27, %s1882_s8  ;;  %494 = vrot.lane.b32.xlu0 %v489_v28, %s1882_s8 }
  0xca   : > { %v276_v29 = vpop.permute.xlu1 %275  ;;  %v241_v30 = vpop.permute.xlu0 %240 }
  0xce   : > { %v278_v33 = vpop.permute.xlu1 %277  ;;  %v243_v34 = vpop.permute.xlu0 %242 }
  0xcf   : > { %v245_v35 = vsel %vm244_vm4, %v241_v30, %v243_v34  ;;  %v249_v36 = vmul.f32 %v243_v34, %v227_v31  ;;  %v280_v38 = vsel %vm279_vm5, %v276_v29, %v278_v33  ;;  %v284_v43 = vmul.f32 %v278_v33, %v227_v31  ;;  %v517_v29 = vld [vmem:[#allocation3 + $0x8] sm:$0xff] }
  0xd0   : > { %v248_v37 = vmul.f32 %v245_v35, %v226_v32  ;;  %v283_v44 = vmul.f32 %v280_v38, %v226_v32  ;;  %v593_v35 = vand.u32 4294901760, %v2083_v45 }
  0xd1   : > { %254 = vrot.lane.b32.xlu1 %v249_v36, %s1882_s8  ;;  %v567_v36 = vsel %vm562_vm10, %v517_v29, 0 }
  0xd2   : > { %v313_v40 = vpop.permute.xlu1 %312  ;;  %v311_v41 = vpop.permute.xlu0 %310  ;;  %252 = vrot.lane.b32.xlu0 %v248_v37, %s1882_s8 }
  0xd3   : > { %v315_v46 = vsel %vm314_vm6, %v311_v41, %v313_v40  ;;  %v319_v49 = vmul.f32 %v313_v40, %v227_v31 }
  0xd4   : > { %v318_v50 = vmul.f32 %v315_v46, %v226_v32 }
  0xd5   : > { %289 = vrot.lane.b32.xlu1 %v284_v43, %s1881_s7 }
  0xd6   : > { %v348_v47 = vpop.permute.xlu1 %347  ;;  %v346_v48 = vpop.permute.xlu0 %345  ;;  %287 = vrot.lane.b32.xlu0 %v283_v44, %s1881_s7  ;;  %v2148_v44 = vand.u32 4294901760, %v567_v36 }
  0xd7   : > { %v350_v51 = vsel %vm349_vm7, %v346_v48, %v348_v47  ;;  %v354_v55 = vmul.f32 %v348_v47, %v227_v31  ;;  %v591_v48 = vand.u32 4294901760, %v2092_v57 }
  0xd8   : > { %v353_v56 = vmul.f32 %v350_v51, %v226_v32 }
  0xd9   : > { %324 = vrot.lane.b32.xlu1 %v319_v49, %s1880_s5  ;;  %v2156_v49 = vsub.f32 %v2083_v45, %v593_v35  ;;  %v2165_v54 = vsub.f32 %v2092_v57, %v591_v48 }
  0xda   : > { %v398_v52 = vpop.permute.xlu1 %397  ;;  %v396_v53 = vpop.permute.xlu0 %395  ;;  %322 = vrot.lane.b32.xlu0 %v318_v50, %s1880_s5 }
  0xdb   : > { %v399_v58 = vsel %vm332_vm0, %v396_v53, %v398_v52  ;;  %v402_v61 = vmul.f32 %v396_v53, %v226_v32 }
  0xdc   : > { %v403_v62 = vmul.f32 %v399_v58, %v227_v31 }
  0xdd   : > { %359 = vrot.lane.b32.xlu1 %v354_v55, %s1879_s28  ;;  %v518_v55 = vld [vmem:[#allocation3 + $0x10] sm:$0xff] }
  0xde   : > { %v431_v59 = vpop.permute.xlu1 %430  ;;  %v429_v60 = vpop.permute.xlu0 %428  ;;  %357 = vrot.lane.b32.xlu0 %v353_v56, %s1879_s28 }
  0xdf   : > { %v432_v63 = vsel %vm297_vm1, %v429_v60, %v431_v59  ;;  %v435_v8 = vmul.f32 %v429_v60, %v226_v32  ;;  %v2175_v59 = vsub.f32 %v567_v36, %v2148_v44 }
  0xe0   : > { %v436_v3 = vmul.f32 %v432_v63, %v227_v31 }
  0xe1   : > { %406 = vrot.lane.b32.xlu1 %v402_v61, %s1878_s23  ;;  %v2523_v61 = vand.u32 4294901760, %v2156_v49 }
  0xe2   : > { %v464_v0 = vpop.permute.xlu1 %463  ;;  %v462_v1 = vpop.permute.xlu0 %461  ;;  %408 = vrot.lane.b32.xlu0 %v403_v62, %s1878_s23  ;;  %v570_v62 = vsel %vm562_vm10, %v518_v55, 0 }
  0xe3   : > { %v465_v2 = vsel %vm262_vm2, %v462_v1, %v464_v0  ;;  %v468_v9 = vmul.f32 %v462_v1, %v226_v32 }
  0xe4   : > { %v469_v4 = vmul.f32 %v465_v2, %v227_v31  ;;  %v2527_v2 = vand.u32 4294901760, %v2165_v54 }
  0xe6   : > { %474 = vrot.lane.b32.xlu1 %v469_v4, %s1874_s27  ;;  %441 = vrot.lane.b32.xlu0 %v436_v3, %s1877_s6  ;;  %v497_v5 = vpop.permute.xlu1 %496  ;;  %v495_v6 = vpop.permute.xlu0 %494  ;;  %v519_v3 = vld [vmem:[#allocation3 + $0x18] sm:$0xff] }
  0xe7   : > { %v498_v7 = vsel %vm228_vm3, %v495_v6, %v497_v5  ;;  %v501_v10 = vmul.f32 %v495_v6, %v226_v32  ;;  %v2133_v32 = vand.u32 4294901760, %v564_v25  ;;  %v2213_v15 = vsel %vm562_vm10, %v519_v3, 0 }
  0xe8   : > { %v502_v12 = vmul.f32 %v498_v7, %v227_v31  ;;  %v2524_v7 = vand.u32 4294901760, %v2175_v59  ;;  %v2242_v29 = vand.u32 4294901760, %v2213_v15 }
  0xe9   : > { %v2143_v40 = vsub.f32 %v564_v25, %v2133_v32 }
  0xea   : > { %472 = vrot.lane.b32.xlu1 %v468_v9, %s1874_s27  ;;  %439 = vrot.lane.b32.xlu0 %v435_v8, %s1877_s6  ;;  %v2199_v9 = vsub.f32 %v2156_v49, %v2523_v61  ;;  %v2235_v25 = vsub.f32 %v2175_v59, %v2524_v7  ;;  %2550 = vst [vmem:[#allocation13_spill] sm:$0xff] %v2242_v29 }
  0xeb   : > { %v2528_v58 = vand.u32 4294901760, %v2143_v40 }
  0xed   : > { %v2188_v6 = vsub.f32 %v2143_v40, %v2528_v58 }
  0xee   : > { %505 = vrot.lane.b32.xlu1 %v501_v10, %s1875_s30  ;;  %507 = vrot.lane.b32.xlu0 %v502_v12, %s1875_s30  ;;  %v2201_v10 = vand.u32 4294901760, %v570_v62  ;;  %s218_s30 = sand.u32 1, %s1858_s16  }
  0xef   : > { %s1509_s5 = sshll.u32 %s218_s30, 6  ;;  %s2473_s19 = scalar_lea.sflag [#allocation5], %s218_s30 }
  0xf0   : > { %2549 = vst [vmem:[#allocation12_spill] sm:$0xff] %v2201_v10  ;;  %s2452_s8 = scalar_lea.vmem [#allocation8], %s1509_s5 }
  0xf1   : > { %s1417_s10 = sshll.u32 %s2452_s8, 4  ;;  %s2467_s10 = int_to_ptr.vmem [resolvable:$true] %s1417_s10 }
  0xf2   : > { %544 = vperm.xlu0 %1738, %v538_v13   ;;  %549 = vperm.xlu1 %1739, %v539_v14   ;;  %s1796_s13 = scalar_lea.vmem %s2467_s10, 1024  ;;  %p1803_p4 = scmp.lt.s32.totalorder %s2467_s10, %s1801_s20 }
  0xf3   : > { %p1797_p10 = scmp.ne.s32.totalorder %s2467_s10, %s1796_s13  ;;  %p1804_p7 = scmp.lt.s32.totalorder %s1802_s22, %s1796_s13 }
  0xf5   : > { %p1798_p2 = pnand %p1797_p10, %p2574_p1  ;;  %p1805_p8 = por %p1804_p7, %p1803_p4 }
  0xf6   : > { %554 = vperm.xlu1 %1739, %v540_v16   ;;  %559 = vperm.xlu0 %1738, %v541_v17  }
  0xf7   : > { %p1799_p3 = pneg %p1798_p2 }
  0xf9   : > { %p1806_p11 = pnand %p1805_p8, %p1799_p3 }
 0x143   : > { %v255_v18 = vpop.permute.xlu1 %254 }
 0x144   : > { %v253_v19 = vpop.permute.xlu0 %252 }
 0x145   : > { %v2121_v20 = vsel %vm228_vm3, %v253_v19, %v255_v18  ;;  %260 = vst.msk [vmem:[#allocation2] sm:$0xff] %vm259_vm8, %v253_v19 }
 0x146   : > { %v575_v26 = vand.u32 4294901760, %v2121_v20 }
 0x147   : > { %v290_v22 = vpop.permute.xlu1 %289 }
 0x148   : > { %v288_v23 = vpop.permute.xlu0 %287  ;;  %v2192_v8 = vsub.f32 %v2121_v20, %v575_v26  ;;  %v2221_v20 = vsub.f32 %v2165_v54, %v2527_v2 }
 0x149   : > { %v2124_v24 = vsel %vm262_vm2, %v288_v23, %v290_v22  ;;  %295 = vst.msk [vmem:[#allocation2 + $0x10] sm:$0xff] %vm294_vm9, %v288_v23 }
 0x14a   : > { %v579_v27 = vand.u32 4294901760, %v2124_v24 }
 0x14b   : > { %v325_v28 = vpop.permute.xlu1 %324 }
 0x14c   : > { %v323_v30 = vpop.permute.xlu0 %322  ;;  %v2131_v31 = vpack.c.bf16 %v579_v27, %v575_v26  ;;  %v520_v34 = vld [vmem:[#allocation2] sm:$0xff]  ;;  %v2206_v12 = vsub.f32 %v2124_v24, %v579_v27  ;;  %v704_v27 = vand.u32 4294901760, %v2192_v8 }
 0x14d   : > { %v2136_v33 = vsel %vm297_vm1, %v323_v30, %v325_v28  ;;  %330 = vst.msk [vmem:[#allocation2 + $0x20] sm:$0xff] %vm329_vm11, %v323_v30  ;;  %v577_v42 = vand.u32 4294901760, %v520_v34  ;;  %v2239_v28 = vsub.f32 %v570_v62, %v2201_v10  ;;  %v2561_v10 = vand.u32 4294901760, %v2165_v54 }
 0x14e   : > { %1520 = vmatprep.subr.bf16.mxu1 %v2131_v31  ;;  %1568 = vmatprep.subr.bf16.mxu0 %v2131_v31  ;;  %v583_v46 = vand.u32 4294901760, %v2136_v33  ;;  %v2530_v36 = vand.u32 4294901760, %v2206_v12  ;;  %v705_v62 = vsub.f32 %v2192_v8, %v704_v27 }
 0x14f   : > { %v360_v37 = vpop.permute.xlu1 %359  ;;  %v2208_v13 = vsub.f32 %v520_v34, %v577_v42 }
 0x150   : > { %v358_v38 = vpop.permute.xlu0 %357  ;;  %v522_v39 = vld [vmem:[#allocation2 + $0x10] sm:$0xff]  ;;  %v2245_v30 = vsub.f32 %v2136_v33, %v583_v46 }
 0x151   : > { %v2146_v41 = vsel %vm332_vm0, %v358_v38, %v360_v37  ;;  %365 = vst.msk [vmem:[#allocation2 + $0x30] sm:$0xff] %vm364_vm12, %v358_v38  ;;  %v581_v43 = vand.u32 4294901760, %v522_v39  ;;  %vm514_vm0 = vcmask 1048440   ;;  %v2529_v37 = vand.u32 4294901760, %v2208_v13 }
 0x152   : > { %v587_v47 = vand.u32 4294901760, %v2146_v41 }
 0x153   : > { %v407_v50 = vpop.permute.xlu1 %406  ;;  %v2158_v51 = vpack.c.bf16 %v581_v43, %v577_v42  ;;  %v2215_v16 = vsub.f32 %v522_v39, %v581_v43 }
 0x154   : > { %v409_v52 = vpop.permute.xlu0 %408  ;;  %v2160_v53 = vpack.c.bf16 %v587_v47, %v583_v46  ;;  %v524_v60 = vld [vmem:[#allocation2 + $0x20] sm:$0xff]  ;;  %v2248_v34 = vsub.f32 %v2146_v41, %v587_v47 }
 0x155   : > { %v2168_v56 = vsel %vm349_vm7, %v407_v50, %v409_v52  ;;  %414 = vst.msk [vmem:[#allocation2 + $0x58] sm:$0xff] %vm349_vm7, %v409_v52  ;;  %1522 = vmatpush1.bf16.msra.mxu1 %v2158_v51  ;;  %1570 = vmatpush1.bf16.msra.mxu0 %v2158_v51  ;;  %v585_v4 = vand.u32 4294901760, %v524_v60  ;;  %v722_v33 = vand.u32 4294901760, %v2215_v16 }
 0x156   : > { %416 = vst.msk [vmem:[#allocation2 + $0x58] sm:$0xff] %vm415_vm13, %v2525_v11  ;;  %1524 = vmatprep.subr.bf16.mxu1 %v2160_v53  ;;  %1572 = vmatprep.subr.bf16.mxu0 %v2160_v53  ;;  %v597_v19 = vand.u32 4294901760, %v2168_v56 }
 0x158   : > { %v475_v63 = vpop.permute.xlu1 %474  ;;  %v442_v0 = vpop.permute.xlu0 %441  ;;  %v526_v1 = vld [vmem:[#allocation2 + $0x30] sm:$0xff]  ;;  %v2260_v50 = vpack.c.bf16 %v597_v19, %v593_v35  ;;  %v2291_v3 = vsub.f32 %v2168_v56, %v597_v19 }
 0x159   : > { %480 = vst.msk [vmem:[#allocation2 + $0x78] sm:$0xff] %vm279_vm5, %v475_v63  ;;  %v589_v5 = vand.u32 4294901760, %v526_v1 }
 0x15a   : > { %447 = vst.msk [vmem:[#allocation2 + $0x68] sm:$0xff] %vm314_vm6, %v442_v0  ;;  %2551 = vst [vmem:[#allocation14_spill] sm:$0xff] %v2260_v50  ;;  %v770_v58 = vand.u32 4294901760, %v2291_v3 }
 0x15b   : > { %482 = vst.msk [vmem:[#allocation2 + $0x78] sm:$0xff] %vm481_vm14, %v2525_v11  ;;  %v2210_v14 = vpack.c.bf16 %v589_v5, %v585_v4  ;;  %v2252_v38 = vsub.f32 %v526_v1, %v589_v5  ;;  %v740_v1 = vand.u32 4294901760, %v2248_v34  ;;  %2552 = vst [vmem:[#allocation15_spill] sm:$0xff] %v2291_v3  ;;  %v723_v5 = vsub.f32 %v2215_v16, %v722_v33 }
 0x15c   : > { %449 = vst.msk [vmem:[#allocation2 + $0x68] sm:$0xff] %vm448_vm15, %v2525_v11  ;;  %v473_v17 = vpop.permute.xlu1 %472  ;;  %v440_v18 = vpop.permute.xlu0 %439 }
 0x15d   : > { %v2224_v21 = vsel %vm279_vm5, %v473_v17, %v475_v63  ;;  %v2227_v22 = vsel %vm314_vm6, %v440_v18, %v442_v0  ;;  %1526 = vmatpush1.bf16.msra.mxu1 %v2210_v14  ;;  %1574 = vmatpush1.bf16.msra.mxu0 %v2210_v14  ;;  %v531_v23 = vld [vmem:[#allocation2 + $0x58] sm:$0xff]  ;;  %v711_v63 = vsub.f32 %v2208_v13, %v2529_v37  ;;  %v728_v0 = vand.u32 4294901760, %v2245_v30 }
 0x15e   : > { %v595_v26 = vand.u32 4294901760, %v531_v23  ;;  %v601_v55 = vand.u32 4294901760, %v2227_v22  ;;  %v605_v57 = vand.u32 4294901760, %v2224_v21  ;;  %v746_v17 = vand.u32 4294901760, %v2252_v38 }
 0x15f   : > { %v712_v7 = vand.u32 4294901760, %v711_v63  ;;  %v729_v19 = vsub.f32 %v2245_v30, %v728_v0 }
 0x160   : > { %v506_v39 = vpop.permute.xlu1 %505  ;;  %v508_v42 = vpop.permute.xlu0 %507  ;;  %v2256_v43 = vpack.c.bf16 %v595_v26, %v591_v48  ;;  %v2267_v46 = vsub.f32 %v531_v23, %v595_v26  ;;  %v2271_v48 = vsub.f32 %v524_v60, %v585_v4  ;;  %v717_v60 = vsub.f32 %v2206_v12, %v2530_v36 }
 0x161   : > { %v2264_v41 = vsel %vm244_vm4, %v506_v39, %v508_v42  ;;  %513 = vst.msk [vmem:[#allocation2 + $0x88] sm:$0xff] %vm244_vm4, %v508_v42  ;;  %v2301_v26 = vpack.c.bf16 %v605_v57, %v601_v55  ;;  %v754_v42 = vand.u32 4294901760, %v2221_v20  ;;  %v747_v20 = vsub.f32 %v2252_v38, %v746_v17 }
 0x162   : > { %v535_v52 = vld [vmem:[#allocation2 + $0x78] sm:$0xff]  ;;  %515 = vst.msk [vmem:[#allocation2 + $0x88] sm:$0xff] %vm514_vm0, %v2525_v11  ;;  %1528 = vmatprep.subr.bf16.mxu1 %v2256_v43  ;;  %1576 = vmatprep.subr.bf16.mxu0 %v2256_v43  ;;  %v764_v39 = vand.u32 4294901760, %v2267_v46  ;;  %v734_v56 = vand.u32 4294901760, %v2271_v48  ;;  %v724_v11 = vand.u32 4294901760, %v723_v5  ;;  %v2324_v24 = vsub.f32 %v2227_v22, %v601_v55 }
 0x163   : > { %v533_v47 = vld [vmem:[#allocation2 + $0x68] sm:$0xff]  ;;  %v603_v35 = vand.u32 4294901760, %v535_v52  ;;  %1530 = vmatpush1.bf16.msra.mxu1 %v2260_v50  ;;  %1578 = vmatpush1.bf16.msra.mxu0 %v2260_v50  ;;  %2554 = vst [vmem:[#allocation17_spill] sm:$0xff] %v2301_v26  ;;  %v2333_v37 = vand.u32 4294901760, %v2264_v41  ;;  %v2557_v22 = vand.u32 4294901760, %v2208_v13  ;;  %v748_v50 = vand.u32 4294901760, %v747_v20 }
 0x164   : > { %v599_v45 = vand.u32 4294901760, %v533_v47  ;;  %v765_v61 = vsub.f32 %v2267_v46, %v764_v39  ;;  %v735_v5 = vsub.f32 %v2271_v48, %v734_v56 }
 0x165   : > { %v2299_v23 = vsub.f32 %v535_v52, %v603_v35  ;;  %v718_v52 = vand.u32 4294901760, %v717_v60  ;;  %v1585_v55 = vpack.c.bf16 %v722_v33, %v2557_v22  ;;  %v782_v33 = vand.u32 4294901760, %v2324_v24 }
 0x166   : > { %v2293_v4 = vpack.c.bf16 %v603_v35, %v599_v45  ;;  %v2297_v18 = vsub.f32 %v533_v47, %v599_v45  ;;  %v706_v47 = vand.u32 4294901760, %v705_v62  ;;  %v741_v45 = vsub.f32 %v2248_v34, %v740_v1 }
 0x167   : > { %v2315_v35 = vsub.f32 %v2213_v15, %v2242_v29  ;;  %v788_v60 = vand.u32 4294901760, %v2299_v23  ;;  %v2327_v15 = vsub.f32 %v2224_v21, %v605_v57  ;;  %v1537_v21 = vpack.c.bf16 %v724_v11, %v712_v7 }
 0x168   : > { %2553 = vst [vmem:[#allocation16_spill] sm:$0xff] %v2293_v4  ;;  %1532 = vmatprep.subr.bf16.mxu1 %v2293_v4  ;;  %1580 = vmatprep.subr.bf16.mxu0 %v2293_v4  ;;  %v776_v62 = vand.u32 4294901760, %v2297_v18  ;;  %v1535_v36 = vpack.c.bf16 %v718_v52, %v706_v47  ;;  %v742_v4 = vand.u32 4294901760, %v741_v45  ;;  %v730_v57 = vand.u32 4294901760, %v729_v19 }
 0x169   : > { %1534 = vmatpush1.bf16.msra.mxu1 %v2301_v26  ;;  %1582 = vmatpush1.bf16.msra.mxu0 %v2301_v26  ;;  %v537_v2 = vld [vmem:[#allocation2 + $0x88] sm:$0xff]  ;;  %v2556_v26 = vand.u32 4294901760, %v2206_v12  ;;  %v766_v47 = vand.u32 4294901760, %v765_v61  ;;  %v736_v11 = vand.u32 4294901760, %v735_v5  ;;  %v771_v7 = vsub.f32 %v2291_v3, %v770_v58 }
 0x16a   : > { %v2329_v63 = vand.u32 4294901760, %v537_v2  ;;  %v777_v52 = vsub.f32 %v2297_v18, %v776_v62  ;;  %v794_v19 = vand.u32 4294901760, %v2327_v15  ;;  %v2558_v45 = vand.u32 4294901760, %v2188_v6 }
 0x16b   : > { %v1583_v29 = vpack.c.bf16 %v2556_v26, %v704_v27  ;;  %v789_v27 = vsub.f32 %v2299_v23, %v788_v60  ;;  %v2559_v61 = vand.u32 4294901760, %v2143_v40  ;;  %v1539_v20 = vpack.c.bf16 %v742_v4, %v730_v57 }
 0x16c   : > { %2555 = vst [vmem:[#allocation18_spill] sm:$0xff] %v2329_v63  ;;  %608 = vmatprep.subr.mxu1 %v2329_v63  ;;  %1051 = vmatprep.subr.mxu0 %v2329_v63  ;;  %v2348_v26 = vsub.f32 %v537_v2, %v2329_v63  ;;  %v1587_v22 = vpack.c.bf16 %v740_v1, %v728_v0  ;;  %v2560_v2 = vand.u32 4294901760, %v2239_v28  ;;  %v760_v6 = vand.u32 4294901760, %v2199_v9 }
 0x16d   : > { %610 = vmatpush1.msra.mxu1 %v2333_v37  ;;  %1053 = vmatpush1.msra.mxu0 %v2333_v37  ;;  %v1541_v5 = vpack.c.bf16 %v748_v50, %v736_v11  ;;  %v1589_v63 = vpack.c.bf16 %v746_v17, %v734_v56  ;;  %v1591_v3 = vpack.c.bf16 %v764_v39, %v2561_v10  ;;  %v778_v4 = vand.u32 4294901760, %v777_v52 }
 0x16e   : > { %1536 = vmatprep.subr.bf16.mxu1 %v1535_v36  ;;  %1584 = vmatprep.subr.bf16.mxu0 %v1583_v29  ;;  %v683_v36 = vsub.f32 %v2239_v28, %v2560_v2  ;;  %v693_v29 = vand.u32 4294901760, %v2315_v35  ;;  %v790_v0 = vand.u32 4294901760, %v789_v27  ;;  %v800_v1 = vand.u32 4294901760, %v2348_v26 }
 0x16f   : > { %663 = vmatmul.mubr.f32.vlgmr.msra.gmra.mrb[0].mxu1 %v2558_v45  ;;  %1104 = vmatmul.mubr.f32.vlgmr.msra.gmra.mrb[0].mxu0 %v2559_v61  ;;  %v1543_v45 = vpack.c.bf16 %v766_v47, %v754_v42  ;;  %v2367_v57 = vsub.f32 %v2264_v41, %v2333_v37  ;;  %v772_v50 = vand.u32 4294901760, %v771_v7  ;;  %v783_v10 = vsub.f32 %v2324_v24, %v782_v33 }
 0x170   : > { %1538 = vmatpush1.bf16.msra.mxu1 %v1537_v21  ;;  %1586 = vmatpush1.bf16.msra.mxu0 %v1585_v55  ;;  %v2562_v21 = vmov 0.0   ;;  %v795_v9 = vsub.f32 %v2327_v15, %v794_v19  ;;  %v2563_v17 = vand.u32 4294901760, %v2235_v25  ;;  %v2564_v39 = vand.u32 4294901760, %v2175_v59 }
 0x171   : > { %1540 = vmatprep.subr.bf16.mxu1 %v1539_v20  ;;  %1588 = vmatprep.subr.bf16.mxu0 %v1587_v22  ;;  %v684_v56 = vand.u32 4294901760, %v683_v36  ;;  %v694_v42 = vsub.f32 %v2315_v35, %v693_v29  ;;  %v2565_v41 = vand.u32 4294901760, %v2156_v49  ;;  %v1547_v47 = vpack.c.bf16 %v790_v0, %v778_v4 }
 0x172   : > { %668 = vmatprep.mubr.f32.mxu1 %v2562_v21  ;;  %1109 = vmatprep.mubr.f32.mxu0 %v2562_v21  ;;  %v1595_v52 = vpack.c.bf16 %v788_v60, %v776_v62  ;;  %v801_v27 = vsub.f32 %v2348_v26, %v800_v1  ;;  %v1545_v11 = vpack.c.bf16 %v772_v50, %v760_v6  ;;  %v784_v25 = vand.u32 4294901760, %v783_v10 }
 0x173   : > { %674 = vmatmul.mubr.f32.gmra.mrb[2].mxu1 %v2563_v17  ;;  %1113 = vmatmul.mubr.f32.gmra.mrb[2].mxu0 %v2564_v39  ;;  %v1593_v55 = vpack.c.bf16 %v770_v58, %v2565_v41  ;;  %v796_v7 = vand.u32 4294901760, %v795_v9  ;;  %v806_v61 = vand.u32 4294901760, %v2367_v57  ;;  %v695_v58 = vand.u32 4294901760, %v694_v42 }
 0x174   : > { %1542 = vmatpush1.bf16.msra.mxu1 %v1541_v5  ;;  %1590 = vmatpush1.bf16.msra.mxu0 %v1589_v63  ;;  %v2566_v63 = vmov %v2560_v2  ;;  %v1597_v60 = vpack.c.bf16 %v794_v19, %v782_v33  ;;  %v1551_v33 = vpack.c.bf16 %v2206_v12, %v2192_v8  ;;  %v1553_v19 = vpack.c.bf16 %v2215_v16, %v2208_v13  ;;  %v2568_v12 = vld [vmem:[#allocation12_spill] sm:$0xff]  ;;  %v2569_v13 = vld [vmem:[#allocation14_spill] sm:$0xff] }
 0x175   : > { %1544 = vmatprep.subr.bf16.mxu1 %v1543_v45  ;;  %1592 = vmatprep.subr.bf16.mxu0 %v1591_v3  ;;  %v802_v3 = vand.u32 4294901760, %v801_v27  ;;  %v1549_v62 = vpack.c.bf16 %v796_v7, %v784_v25  ;;  %v807_v20 = vsub.f32 %v2367_v57, %v806_v61  ;;  %v1555_v2 = vpack.c.bf16 %v2248_v34, %v2245_v30  ;;  %v2572_v30 = vld [vmem:[#allocation17_spill] sm:$0xff]  ;;  %v2573_v34 = vld [vmem:[#allocation18_spill] sm:$0xff] }
 0x176   : > { %679 = vmatprep.mubr.f32.mxu1 %v2562_v21  ;;  %1118 = vmatprep.mubr.f32.mxu0 %v2562_v21  ;;  %v1559_v8 = vpack.c.bf16 %v2267_v46, %v2165_v54  ;;  %v1565_v16 = vpack.c.bf16 %v2327_v15, %v2324_v24 }
 0x177   : > { %685 = vmatmul.mubr.f32.gmra.mrb[4].mxu1 %v684_v56  ;;  %1122 = vmatmul.mubr.f32.gmra.mrb[4].mxu0 %v2566_v63  ;;  %v808_v22 = vand.u32 4294901760, %v807_v20 }
 0x178   : > { %1546 = vmatpush1.bf16.msra.mxu1 %v1545_v11  ;;  %1594 = vmatpush1.bf16.msra.mxu0 %v1593_v55 }
 0x179   : > { %1548 = vmatprep.subr.bf16.mxu1 %v1547_v47  ;;  %1596 = vmatprep.subr.bf16.mxu0 %v1595_v52 }
 0x17a   : > { %690 = vmatprep.mubr.f32.mxu1 %v2562_v21  ;;  %1127 = vmatprep.mubr.f32.mxu0 %v2562_v21 }
 0x17b   : > { %696 = vmatmul.mubr.f32.gmra.mrb[6].mxu1 %v695_v58  ;;  %1131 = vmatmul.mubr.f32.gmra.mrb[6].mxu0 %v693_v29 }
 0x17c   : > { %1550 = vmatpush1.bf16.msra.mxu1 %v1549_v62  ;;  %1598 = vmatpush1.bf16.msra.mxu0 %v1597_v60 }
 0x17d   : > { %803 = vmatprep.subr.mxu1 %v802_v3  ;;  %1204 = vmatprep.subr.mxu0 %v800_v1 }
 0x17e   : > { %856 = vmatprep.mubr.f32.mxu1 %v2562_v21  ;;  %1255 = vmatprep.mubr.f32.mxu0 %v2562_v21 }
 0x180   : > { %809 = vmatpush1.msra.mxu1 %v808_v22  ;;  %1208 = vmatpush1.msra.mxu0 %v806_v61 }
 0x181   : > { %1552 = vmatprep.subr.bf16.mxu1 %v1551_v33  ;;  %1600 = vmatprep.subr.bf16.mxu0 %v2131_v31  ;;  %v1557_v31 = vpack.c.bf16 %v2252_v38, %v2271_v48 }
 0x182   : > { %858 = vmatmul.mubr.f32.vlgmr.msra.gmra.mrb[0].mxu1 %v2133_v32  ;;  %1257 = vmatmul.mubr.f32.vlgmr.msra.gmra.mrb[0].mxu0 %v2133_v32 }
 0x183   : > { %1554 = vmatpush1.bf16.msra.mxu1 %v1553_v19  ;;  %1602 = vmatpush1.bf16.msra.mxu0 %v2158_v51  ;;  %v1563_v51 = vpack.c.bf16 %v2299_v23, %v2297_v18 }
 0x184   : > { %1556 = vmatprep.subr.bf16.mxu1 %v1555_v2  ;;  %1604 = vmatprep.subr.bf16.mxu0 %v2160_v53  ;;  %v2567_v53 = vld [vmem:[#allocation15_spill] sm:$0xff] }
 0x185   : > { %863 = vmatprep.mubr.f32.mxu1 %v2562_v21  ;;  %1262 = vmatprep.mubr.f32.mxu0 %v2562_v21  ;;  %v1561_v54 = vpack.c.bf16 %v2567_v53, %v2156_v49  ;;  %v2571_v49 = vld [vmem:[#allocation13_spill] sm:$0xff] }
 0x186   : > { %865 = vmatmul.mubr.f32.gmra.mrb[2].mxu1 %v2148_v44  ;;  %1264 = vmatmul.mubr.f32.gmra.mrb[2].mxu0 %v2148_v44 }
 0x187   : > { %1558 = vmatpush1.bf16.msra.mxu1 %v1557_v31  ;;  %1606 = vmatpush1.bf16.msra.mxu0 %v2210_v14  ;;  %v2570_v14 = vld [vmem:[#allocation16_spill] sm:$0xff] }
 0x188   : > { %1560 = vmatprep.subr.bf16.mxu1 %v1559_v8  ;;  %1608 = vmatprep.subr.bf16.mxu0 %v2256_v43 }
 0x189   : > { %870 = vmatprep.mubr.f32.mxu1 %v2562_v21  ;;  %1269 = vmatprep.mubr.f32.mxu0 %v2562_v21 }
 0x18a   : > { %872 = vmatmul.mubr.f32.gmra.mrb[4].mxu1 %v2568_v12  ;;  %1271 = vmatmul.mubr.f32.gmra.mrb[4].mxu0 %v2568_v12 }
 0x18b   : > { %1562 = vmatpush1.bf16.msra.mxu1 %v1561_v54  ;;  %1610 = vmatpush1.bf16.msra.mxu0 %v2569_v13 }
 0x18c   : > { %1564 = vmatprep.subr.bf16.mxu1 %v1563_v51  ;;  %1612 = vmatprep.subr.bf16.mxu0 %v2570_v14 }
 0x18d   : > { %877 = vmatprep.mubr.f32.mxu1 %v2562_v21  ;;  %1276 = vmatprep.mubr.f32.mxu0 %v2562_v21 }
 0x18e   : > { %879 = vmatmul.mubr.f32.gmra.mrb[6].mxu1 %v2571_v49  ;;  %1278 = vmatmul.mubr.f32.gmra.mrb[6].mxu0 %v2571_v49 }
 0x18f   : > { %1566 = vmatpush1.bf16.msra.mxu1 %v1565_v16  ;;  %1614 = vmatpush1.bf16.msra.mxu0 %v2572_v30 }
 0x190   : > { %935 = vmatprep.subr.mxu1 %v2348_v26  ;;  %1317 = vmatprep.subr.mxu0 %v2573_v34 }
 0x191   : > { %985 = vmatprep.mubr.f32.mxu1 %v2562_v21  ;;  %1366 = vmatprep.mubr.f32.mxu0 %v2562_v21 }
 0x193   : > { %938 = vmatpush1.msra.mxu1 %v2367_v57  ;;  %1319 = vmatpush1.msra.mxu0 %v2333_v37 }
 0x194   : > { %988 = vmatmul.mubr.f32.vlgmr.msra.gmra.mrb[0].mxu1 %v2143_v40  ;;  %1368 = vmatmul.mubr.f32.vlgmr.msra.gmra.mrb[0].mxu0 %v2133_v32  ;;  %v545_v32 = vpop.permute.xlu0 %544  ;;  %v550_v40 = vpop.permute.xlu1 %549 }
 0x195   : > { %993 = vmatprep.mubr.f32.mxu1 %v2562_v21  ;;  %1373 = vmatprep.mubr.f32.mxu0 %v2562_v21 }
 0x198   : > { %996 = vmatmul.mubr.f32.gmra.mrb[2].mxu1 %v2175_v59  ;;  %1375 = vmatmul.mubr.f32.gmra.mrb[2].mxu0 %v2148_v44  ;;  %v555_v36 = vpop.permute.xlu1 %554  ;;  %v560_v50 = vpop.permute.xlu0 %559 }
 0x199   : > { %1001 = vmatprep.mubr.f32.mxu1 %v2562_v21  ;;  %1380 = vmatprep.mubr.f32.mxu0 %v2562_v21 }
 0x19c   : > { %1004 = vmatmul.mubr.f32.gmra.mrb[4].mxu1 %v2239_v28  ;;  %1382 = vmatmul.mubr.f32.gmra.mrb[4].mxu0 %v2568_v12 }
 0x19d   : > { %1009 = vmatprep.mubr.f32.mxu1 %v2562_v21  ;;  %1387 = vmatprep.mubr.f32.mxu0 %v2562_v21 }
 0x1a0   : > { %1012 = vmatmul.mubr.f32.gmra.mrb[6].mxu1 %v2315_v35  ;;  %1389 = vmatmul.mubr.f32.gmra.mrb[6].mxu0 %v2571_v49 }
 0x267   : > { %v989_v44 = vpop.f32.mrb[0].mxu1  ;;  %v1369_v59 = vpop.f32.mrb[0].mxu0 }
 0x268   : > { %v1615_v24 = vadd.f32 %v989_v44, %v545_v32  ;;  %v991_v37 = vpop.f32.mrb[1].mxu1  ;;  %v1371_v28 = vpop.f32.mrb[1].mxu0 }
 0x269   : > { %v1617_v38 = vadd.f32 %v991_v37, %v545_v32 }
 0x26a   : > { %v1616_v43 = vadd.f32 %v1615_v24, %v1369_v59 }
 0x26b   : > { %v1618_v46 = vadd.f32 %v1617_v38, %v1371_v28  ;;  %v997_v48 = vpop.f32.mrb[2].mxu1  ;;  %v1376_v18 = vpop.f32.mrb[2].mxu0 }
 0x26c   : > { %1395 = vst [vmem:[%s2452_s8] sm:$0xff] %v1616_v43  ;;  %v1619_v23 = vadd.f32 %v997_v48, %v550_v40  ;;  %v999_v35 = vpop.f32.mrb[3].mxu1  ;;  %v1378_v15 = vpop.f32.mrb[3].mxu0 }
 0x26d   : > { %1396 = vst [vmem:[%s2452_s8 + $0x8] sm:$0xff] %v1618_v46  ;;  %v1621_v26 = vadd.f32 %v999_v35, %v550_v40 }
 0x26e   : > { %v1620_v29 = vadd.f32 %v1619_v23, %v1376_v18 }
 0x26f   : > { %v1622_v5 = vadd.f32 %v1621_v26, %v1378_v15  ;;  %v1005_v6 = vpop.f32.mrb[4].mxu1  ;;  %v1383_v45 = vpop.f32.mrb[4].mxu0 }
 0x270   : > { %1397 = vst [vmem:[%s2452_s8 + $0x10] sm:$0xff] %v1620_v29  ;;  %v1623_v4 = vadd.f32 %v1005_v6, %v555_v36  ;;  %v1007_v0 = vpop.f32.mrb[5].mxu1  ;;  %v1385_v1 = vpop.f32.mrb[5].mxu0 }
 0x271   : > { %1398 = vst [vmem:[%s2452_s8 + $0x18] sm:$0xff] %v1622_v5  ;;  %v1625_v57 = vadd.f32 %v1007_v0, %v555_v36 }
 0x272   : > { %v1624_v21 = vadd.f32 %v1623_v4, %v1383_v45 }
 0x273   : > { %v1626_v10 = vadd.f32 %v1625_v57, %v1385_v1  ;;  %v1013_v9 = vpop.f32.mrb[6].mxu1  ;;  %v1390_v17 = vpop.f32.mrb[6].mxu0 }
 0x274   : > { %1399 = vst [vmem:[%s2452_s8 + $0x20] sm:$0xff] %v1624_v21  ;;  %v1627_v39 = vadd.f32 %v1013_v9, %v560_v50  ;;  %v1015_v56 = vpop.f32.mrb[7].mxu1  ;;  %v1392_v42 = vpop.f32.mrb[7].mxu0 }
 0x275   : > { %1400 = vst [vmem:[%s2452_s8 + $0x28] sm:$0xff] %v1626_v10  ;;  %v1629_v41 = vadd.f32 %v1015_v56, %v560_v50 }
 0x276   : > { %v1628_v55 = vadd.f32 %v1627_v39, %v1390_v17 }
 0x277   : > { %v1630_v47 = vadd.f32 %v1629_v41, %v1392_v42 }
 0x278   : > { %1401 = vst [vmem:[%s2452_s8 + $0x30] sm:$0xff] %v1628_v55 }
 0x279   : > { %1402 = vst [vmem:[%s2452_s8 + $0x38] sm:$0xff] %v1630_v47 }
 0x27a   : > { %1809 = shalt.err (!%p1806_p11)
}
 0x27b   : > { %s1810_s27 = scalar_lea.hbm %s2465_s29, 1024  ;;  %s1814_s28 = scalar_lea.hbm %s2519_s4, 2048 }
 0x27c   : > { %p1811_p13 = scmp.ne.s32.totalorder %s2465_s29, %s1810_s27  ;;  %p1815_p6 = scmp.lt.u32.totalorder %s2465_s29, %s2519_s4 }
 0x27d   : > { %p1816_p9 = scmp.lt.u32.totalorder %s1814_s28, %s1810_s27  ;;  %p1818_p10 = scmp.lt.u32.totalorder %s1810_s27, %s2465_s29 }
 0x27e   : > { %p1812_p0 = pnand %p1811_p13, %p2574_p1 }
 0x27f   : > { %p1817_p12 = por %p1816_p9, %p1815_p6 }
 0x280   : > { %p1813_p5 = pneg %p1812_p0 }
 0x281   : > { %p1819_p2 = por %p1818_p10, %p1817_p12 }
 0x283   : > { %p1820_p3 = pnand %p1819_p2, %p1813_p5 }
 0x285   : > { %1823 = shalt.err (!%p1820_p3)
}
 0x286   : > { %s1885_s8 = smov 256  }
 0x287   : > { %1671 = dma.vmem_to_hbm [thread:$0]  (%p2574_p1), %s2467_s10, 1024, %s2465_s29, %s2473_s19, %s1885_s8, %s1885_s8, %s1881_s7  }
 0x288 PF: > { %p1688_p4 = scmp.ge.s32.totalorder %s1866_s18, 2  ;;  %s1432_s9 = sand.u32 1, %s1854_s15  }
 0x289   : > { %p2575_p7 = scmp.ne.s32.totalorder %s2541_s26, 0  ;;  %s1433_s11 = scalar_lea.sflag [#allocation5], %s1432_s9 }
 0x28b   : > { %p1681_p8 = pnand %p1688_p4, %p2575_p7 }
 0x28d   : > { %1849 = dma.done.wait (!%p1681_p8), %s1433_s11, 1024  }
 0x28e   : > { %1851 = vsyncadd (!%p1681_p8), %s1433_s11, 4294966272  ;;  %p16_p11 = scmp.ge.s32.totalorder %s1936_s21, 4   ;;  %s2576_s15 = smov %s1858_s16 }
 0x28f   : > { %s2577_s16 = smov %s1862_s17  ;;  %s2578_s17 = smov %s1947_s24 }
 0x290   : > { %s2579_s18 = smov %s1936_s21  ;;  %18 = sbr.rel (!%p16_p11) target bundleno = 5 (0x5), region = 88 }
 0x297   :  { %1438 = vsyncpa [#allocation4], 1 }
 0x298   :  { %1440 = vsyncpa [#allocation4 + $0x1], 1 }
 0x299   :  { %1441 = vsyncpa [#allocation7], 1 }
 0x29a   :  { %1442 = vsyncpa [#allocation5], 1 }
 0x29b   :  { %1444 = vsyncpa [#allocation5 + $0x1], 1 }

</bundles_post_ra>
